<compile_context>
chip_gen: v6e
topology: v6e:2x2x1
jax: 0.10.0
libtpu: 0.0.40
codegen_flags: <defaults>
</compile_context>

<pallas_src>
import functools

import jax
import jax.numpy as jnp
from jax.experimental import pallas as pl
from jax.experimental.pallas import tpu as pltpu

LN_EPS = 1e-5  # nn.LayerNorm default


def _round_up(x, m):
    return (x + m - 1) // m * m


def _vmem_capacity_bytes():
    """~85% of the physical per-core VMEM (generation-aware), with fallback."""
    try:
        info = pltpu.get_tpu_info()
        cap = getattr(info, "vmem_capacity_bytes", None)
        if cap:
            return int(0.85 * int(cap))
    except Exception:
        pass
    # Conservative fallback that also fits v7x's 64 MiB per-TC VMEM.
    return int(0.85 * (64 * 1024 * 1024))


def _ln_relu(y, g_row, beta_row, n_valid, out_dtype):
    """LayerNorm(normalized over the last dim, true width n_valid) + ReLU.

    y is an f32 (tb, outpad) tile whose padded columns (>= n_valid) are zero.
    Uses a two-pass variance (numerically robust) and masks padded columns.
    """
    inv_n = 1.0 / float(n_valid)
    outpad = y.shape[-1]
    if n_valid == outpad:
        mean = jnp.sum(y, axis=-1, keepdims=True) * inv_n
        diff = y - mean
    else:
        col = jax.lax.broadcasted_iota(jnp.int32, y.shape, 1)
        valid = col < n_valid
        ym = jnp.where(valid, y, 0.0)
        mean = jnp.sum(ym, axis=-1, keepdims=True) * inv_n
        diff = jnp.where(valid, y - mean, 0.0)
    var = jnp.sum(diff * diff, axis=-1, keepdims=True) * inv_n
    inv = jax.lax.rsqrt(var + LN_EPS)
    normed = diff * inv * g_row.astype(jnp.float32) + beta_row.astype(jnp.float32)
    return jnp.maximum(normed, 0.0).astype(out_dtype)


def clayer_kernel_fused(x_ref, w_ref, b_ref, g_ref, beta_ref, o_ref, *, n_valid):
    """Single-K-step fast path: resident weight, no accumulator scratch."""
    y = jnp.dot(x_ref[...], w_ref[...], preferred_element_type=jnp.float32)
    y = y + b_ref[...].astype(jnp.float32)
    o_ref[...] = _ln_relu(y, g_ref[...], beta_ref[...], n_valid, o_ref.dtype)


def clayer_kernel_acc(x_ref, w_ref, b_ref, g_ref, beta_ref, o_ref, acc_ref, *,
                      n_valid, indim, tk):
    """K-tiled accumulate path for weights too large to keep VMEM-resident."""
    k = pl.program_id(1)

    @pl.when(k == 0)
    def _():
        acc_ref[...] = jnp.zeros_like(acc_ref)

    x_blk = x_ref[...]
    w_blk = w_ref[...]
    if indim % tk != 0:
        # The last K tile is partial; out-of-range HBM contents are undefined
        # (possibly NaN/Inf), so zero the invalid K positions of BOTH operands
        # (a couple of VPU selects, hidden under MXU work).
        k_base = k * tk
        x_lanes = k_base + jax.lax.broadcasted_iota(jnp.int32, x_blk.shape, 1)
        x_blk = jnp.where(x_lanes < indim, x_blk, jnp.zeros_like(x_blk))
        w_rows = k_base + jax.lax.broadcasted_iota(jnp.int32, w_blk.shape, 0)
        w_blk = jnp.where(w_rows < indim, w_blk, jnp.zeros_like(w_blk))

    acc_ref[...] += jnp.dot(x_blk, w_blk, preferred_element_type=jnp.float32)

    @pl.when(k == pl.num_programs(1) - 1)
    def _():
        y = acc_ref[...] + b_ref[...].astype(jnp.float32)
        o_ref[...] = _ln_relu(y, g_ref[...], beta_ref[...], n_valid, o_ref.dtype)


def prepare_clayer_params(w, b, gamma, beta):
    """Pad parameters ONCE (at init) to a lane-dense outdim multiple of 128.

    Padded weight/bias/gamma/beta columns are zero, so padded output columns
    are exactly zero and never contribute to the LayerNorm statistics.
    """
    indim, outdim = w.shape
    outpad = _round_up(outdim, 128)
    if outpad != outdim:
        w = jnp.pad(w, ((0, 0), (0, outpad - outdim)))
        b = jnp.pad(b, (0, outpad - outdim))
        gamma = jnp.pad(gamma, (0, outpad - outdim))
        beta = jnp.pad(beta, (0, outpad - outdim))
    return dict(w=w, b=b.reshape(1, outpad), gamma=gamma.reshape(1, outpad),
                beta=beta.reshape(1, outpad), indim=indim, outdim=outdim,
                outpad=outpad)


def clayer_forward(x, params, *, tb=256, tk=512, slice_output=True,
                   force_k_tiled=False):
    """Fused x @ W + b -> LayerNorm(outdim) -> ReLU.

    x: (B, indim); params: output of prepare_clayer_params (padded once).
    bf16 x / weights are supported as-is (f32 MXU accumulation, f32 LN math).
    """
    B, indim = x.shape
    assert indim == params["indim"]
    outdim, outpad = params["outdim"], params["outpad"]
    w, b2, g2, be2 = params["w"], params["b"], params["gamma"], params["beta"]
    out_dtype = x.dtype

    xb = jnp.dtype(x.dtype).itemsize
    wb = jnp.dtype(w.dtype).itemsize
    ob = jnp.dtype(out_dtype).itemsize

    vmem_cap = _vmem_capacity_bytes()
    budget = int(0.8 * vmem_cap)

    # Row tile: multiple of 16 sublanes (covers bf16 packing), capped by the
    # batch. If the batch allows, keep >= 2 batch tiles so both v7x
    # TensorCores get work on the "parallel" axis.
    tb = max(16, min(_round_up(tb, 16), _round_up(B, 16)))
    if tb > B:
        tb = _round_up(B, 8)  # tiny-batch edge: single (possibly partial) tile
    if B > 16:
        tb = min(tb, max(16, _round_up((B + 1) // 2, 16)))

    def fused_need(tb_):
        return (2 * tb_ * indim * xb          # x tile, double-buffered
                + 2 * indim * outpad * wb     # resident weight (2 bufs alloc'd)
                + 2 * tb_ * outpad * ob       # output tile, double-buffered
                + tb_ * outpad * 4            # f32 y temporary
                + 2 * 3 * outpad * 4)         # bias / gamma / beta rows

    # Prefer the single-K-step fast path: weight DMA'd from HBM exactly once
    # (constant block index), no accumulator scratch, no x padding along K.
    use_fused = not force_k_tiled
    if use_fused:
        tb_f = tb
        while fused_need(tb_f) > budget and tb_f > 32:
            tb_f = max(32, _round_up(tb_f // 2, 16))
        use_fused = fused_need(tb_f) <= budget
        if use_fused:
            tb = tb_f

    if use_fused:
        gm = pl.cdiv(B, tb)
        vmem_limit = int(min(vmem_cap,
                             max(int(1.5 * fused_need(tb)), 16 * 1024 * 1024)))
        out_padded = pl.pallas_call(
            functools.partial(clayer_kernel_fused, n_valid=outdim),
            out_shape=jax.ShapeDtypeStruct((B, outpad), out_dtype),
            grid_spec=pltpu.PrefetchScalarGridSpec(
                num_scalar_prefetch=0,
                grid=(gm,),
                in_specs=[
                    # Full K extent as the block dim -> no x/W padding along K.
                    pl.BlockSpec((tb, indim), lambda i: (i, 0)),       # x tile
                    pl.BlockSpec((indim, outpad), lambda i: (0, 0)),   # W (resident)
                    pl.BlockSpec((1, outpad), lambda i: (0, 0)),       # bias
                    pl.BlockSpec((1, outpad), lambda i: (0, 0)),       # LN gamma
                    pl.BlockSpec((1, outpad), lambda i: (0, 0)),       # LN beta
                ],
                out_specs=pl.BlockSpec((tb, outpad), lambda i: (i, 0)),
            ),
            compiler_params=pltpu.CompilerParams(
                dimension_semantics=("parallel",),
                vmem_limit_bytes=vmem_limit,
            ),
        )(x, w, b2, g2, be2)
    else:
        # K-tiled accumulate fallback (large indim * outdim). Keep tk >= 512
        # when indim allows so the acc read-modify-write stays hidden under
        # MXU work; deeper buffering on the weight slab hides its re-fetch
        # across the batch-tile boundary.
        tk = max(128, min(_round_up(tk, 128), _round_up(indim, 128)))

        def acc_need(tb_, tk_):
            return (2 * tb_ * tk_ * xb        # x tile, double-buffered
                    + 3 * tk_ * outpad * wb   # weight slab, Buffered(3)
                    + 2 * tb_ * outpad * ob   # output tile, double-buffered
                    + tb_ * outpad * 4        # f32 accumulator scratch
                    + 2 * 3 * outpad * 4)

        while acc_need(tb, tk) > budget and (tk > 256 or tb > 32):
            if tk > 256:
                tk = max(256, tk // 2)
            else:
                tb = max(32, _round_up(tb // 2, 16))
        # TODO(synk): for very wide outdim that still overflows VMEM here, add
        # an N grid axis with a two-pass LayerNorm (stats pass + normalize).

        gm = pl.cdiv(B, tb)
        gk = pl.cdiv(indim, tk)
        vmem_limit = int(min(vmem_cap,
                             max(int(1.5 * acc_need(tb, tk)), 16 * 1024 * 1024)))
        out_padded = pl.pallas_call(
            functools.partial(clayer_kernel_acc, n_valid=outdim,
                              indim=indim, tk=tk),
            out_shape=jax.ShapeDtypeStruct((B, outpad), out_dtype),
            grid_spec=pltpu.PrefetchScalarGridSpec(
                num_scalar_prefetch=0,
                grid=(gm, gk),
                in_specs=[
                    pl.BlockSpec((tb, tk), lambda i, k: (i, k)),        # x tile
                    pl.BlockSpec((tk, outpad), lambda i, k: (k, 0),
                                 pipeline_mode=pl.Buffered(3)),         # W slab
                    pl.BlockSpec((1, outpad), lambda i, k: (0, 0)),     # bias
                    pl.BlockSpec((1, outpad), lambda i, k: (0, 0)),     # LN gamma
                    pl.BlockSpec((1, outpad), lambda i, k: (0, 0)),     # LN beta
                ],
                out_specs=pl.BlockSpec((tb, outpad), lambda i, k: (i, 0)),
                scratch_shapes=[pltpu.VMEM((tb, outpad), jnp.float32)],
            ),
            compiler_params=pltpu.CompilerParams(
                dimension_semantics=("parallel", "arbitrary"),
                vmem_limit_bytes=vmem_limit,
            ),
        )(x, w, b2, g2, be2)

    if slice_output and outpad != outdim:
        # Consumers that accept the lane-dense (B, outpad) layout (padded
        # columns are exactly zero) should pass slice_output=False and skip
        # this extra output-sized HBM round trip.
        out_padded = out_padded[:, :outdim]
    return out_padded


def reference_forward(x, w, b, gamma, beta):
    y = x @ w + b
    mean = jnp.mean(y, axis=-1, keepdims=True)
    var = jnp.mean((y - mean) ** 2, axis=-1, keepdims=True)
    normed = (y - mean) / jnp.sqrt(var + LN_EPS) * gamma + beta
    return jnp.maximum(normed, 0.0)


if __name__ == "__main__":
    # Small-but-representative shapes: batch=512, indim=192, outdim=80.
    B, indim, outdim = 512, 192, 80
    key = jax.random.PRNGKey(0)
    kx, kw, kb = jax.random.split(key, 3)

    x = jax.random.normal(kx, (B, indim), dtype=jnp.float32)

    # Deterministic parameter init (Linear: uniform(+/-1/sqrt(indim)); LN: 1/0).
    limit = 1.0 / jnp.sqrt(indim)
    w = jax.random.uniform(kw, (indim, outdim), minval=-limit, maxval=limit,
                           dtype=jnp.float32)
    b = jax.random.uniform(kb, (outdim,), minval=-limit, maxval=limit,
                           dtype=jnp.float32)
    gamma = jnp.ones((outdim,), dtype=jnp.float32)
    beta = jnp.zeros((outdim,), dtype=jnp.float32)

    # Pad parameters once (hoisted out of the forward path).
    params = prepare_clayer_params(w, b, gamma, beta)
    ref = reference_forward(x, w, b, gamma, beta)

    # Fast path: gk == 1, weight fetched once / VMEM-resident, no acc scratch,
    # 2 batch tiles on the "parallel" axis (both v7x TensorCores busy).
    out_fast = jax.block_until_ready(clayer_forward(x, params))
    assert out_fast.shape == (B, outdim)
    assert jnp.allclose(out_fast, ref, atol=5e-5, rtol=5e-5), "fast-path mismatch"

    # Forced K-tiled fallback with a deliberately small tk (128) so gk == 2 and
    # the last K tile is partial -> exercises the accumulator init/finalize and
    # the in-kernel tail masking. (Production default stays tk=512.)
    out_acc = jax.block_until_ready(
        clayer_forward(x, params, tk=128, force_k_tiled=True))
    assert out_acc.shape == (B, outdim)
    assert jnp.allclose(out_acc, ref, atol=5e-5, rtol=5e-5), "acc-path mismatch"

    print("KERNEL_OK")
</pallas_src>

<mosaic_0001>
module attributes {stable_mosaic.version = 11 : i64} {
  func.func @clayer_kernel_fused(%arg0: i32, %arg1: memref<256x192xf32, #tpu.memory_space<vmem>>, %arg2: memref<192x128xf32, #tpu.memory_space<vmem>>, %arg3: memref<1x128xf32, #tpu.memory_space<vmem>>, %arg4: memref<1x128xf32, #tpu.memory_space<vmem>>, %arg5: memref<1x128xf32, #tpu.memory_space<vmem>>, %arg6: memref<256x128xf32, #tpu.memory_space<vmem>>) attributes {dimension_semantics = [#tpu.dimension_semantics<parallel>], iteration_bounds = array<i64: 2>, scalar_prefetch = 0 : i64, scratch_operands = 0 : i64, tpu.core_type = #tpu.core_type<tc>, window_params = [{transform_indices = @transform_0, window_bounds = array<i64: 256, 192>}, {pipeline_mode = #tpu.pipeline_mode<synchronous>, transform_indices = @transform_1, window_bounds = array<i64: 192, 128>}, {pipeline_mode = #tpu.pipeline_mode<synchronous>, transform_indices = @transform_2, window_bounds = array<i64: 1, 128>}, {pipeline_mode = #tpu.pipeline_mode<synchronous>, transform_indices = @transform_3, window_bounds = array<i64: 1, 128>}, {pipeline_mode = #tpu.pipeline_mode<synchronous>, transform_indices = @transform_4, window_bounds = array<i64: 1, 128>}, {transform_indices = @transform_5, window_bounds = array<i64: 256, 128>}]} {
    %c0 = arith.constant 0 : index
    %c0_0 = arith.constant 0 : index
    %0 = vector.load %arg1[%c0, %c0_0] : memref<256x192xf32, #tpu.memory_space<vmem>>, vector<256x192xf32>
    %c0_1 = arith.constant 0 : index
    %c0_2 = arith.constant 0 : index
    %1 = vector.load %arg2[%c0_1, %c0_2] : memref<192x128xf32, #tpu.memory_space<vmem>>, vector<192x128xf32>
    %cst = arith.constant dense<0.000000e+00> : vector<256x128xf32>
    %2 = tpu.matmul %0, %1, %cst {dimension_numbers = #tpu.dot_dimension_numbers<[1], [0], [0], [1], [0, 0, 1, 1], [], []>} : vector<256x192xf32>, vector<192x128xf32>, vector<256x128xf32> -> vector<256x128xf32>
    %c0_3 = arith.constant 0 : index
    %c0_4 = arith.constant 0 : index
    %3 = vector.load %arg3[%c0_3, %c0_4] : memref<1x128xf32, #tpu.memory_space<vmem>>, vector<1x128xf32>
    %4 = vector.broadcast %3 : vector<1x128xf32> to vector<256x128xf32>
    %5 = arith.addf %2, %4 : vector<256x128xf32>
    %c0_5 = arith.constant 0 : index
    %c0_6 = arith.constant 0 : index
    %6 = vector.load %arg4[%c0_5, %c0_6] : memref<1x128xf32, #tpu.memory_space<vmem>>, vector<1x128xf32>
    %c0_7 = arith.constant 0 : index
    %c0_8 = arith.constant 0 : index
    %7 = vector.load %arg5[%c0_7, %c0_8] : memref<1x128xf32, #tpu.memory_space<vmem>>, vector<1x128xf32>
    %8 = tpu.iota {dimensions = array<i32: 1>} : vector<256x128xi32>
    %c80_i32 = arith.constant 80 : i32
    %9 = vector.broadcast %c80_i32 : i32 to vector<256x128xi32>
    %10 = arith.cmpi slt, %8, %9 : vector<256x128xi32>
    %cst_9 = arith.constant 0.000000e+00 : f32
    %11 = vector.broadcast %cst_9 : f32 to vector<256x128xf32>
    %12 = arith.select %10, %5, %11 : vector<256x128xi1>, vector<256x128xf32>
    %cst_10 = arith.constant dense<0.000000e+00> : vector<256xf32>
    %13 = vector.multi_reduction <add>, %12, %cst_10 [1] : vector<256x128xf32> to vector<256xf32>
    %14 = vector.shape_cast %13 : vector<256xf32> to vector<256x1xf32>
    %cst_11 = arith.constant 1.250000e-02 : f32
    %15 = vector.broadcast %cst_11 : f32 to vector<256x1xf32>
    %16 = arith.mulf %14, %15 : vector<256x1xf32>
    %17 = vector.broadcast %16 : vector<256x1xf32> to vector<256x128xf32>
    %18 = arith.subf %5, %17 : vector<256x128xf32>
    %cst_12 = arith.constant 0.000000e+00 : f32
    %19 = vector.broadcast %cst_12 : f32 to vector<256x128xf32>
    %20 = arith.select %10, %18, %19 : vector<256x128xi1>, vector<256x128xf32>
    %21 = arith.mulf %20, %20 : vector<256x128xf32>
    %cst_13 = arith.constant dense<0.000000e+00> : vector<256xf32>
    %22 = vector.multi_reduction <add>, %21, %cst_13 [1] : vector<256x128xf32> to vector<256xf32>
    %23 = vector.shape_cast %22 : vector<256xf32> to vector<256x1xf32>
    %cst_14 = arith.constant 1.250000e-02 : f32
    %24 = vector.broadcast %cst_14 : f32 to vector<256x1xf32>
    %25 = arith.mulf %23, %24 : vector<256x1xf32>
    %cst_15 = arith.constant 9.99999974E-6 : f32
    %26 = vector.broadcast %cst_15 : f32 to vector<256x1xf32>
    %27 = arith.addf %25, %26 : vector<256x1xf32>
    %28 = math.rsqrt %27 : vector<256x1xf32>
    %29 = vector.broadcast %28 : vector<256x1xf32> to vector<256x128xf32>
    %30 = arith.mulf %20, %29 : vector<256x128xf32>
    %31 = vector.broadcast %6 : vector<1x128xf32> to vector<256x128xf32>
    %32 = arith.mulf %30, %31 : vector<256x128xf32>
    %33 = vector.broadcast %7 : vector<1x128xf32> to vector<256x128xf32>
    %34 = arith.addf %32, %33 : vector<256x128xf32>
    %cst_16 = arith.constant 0.000000e+00 : f32
    %35 = vector.broadcast %cst_16 : f32 to vector<256x128xf32>
    %36 = arith.maximumf %34, %35 : vector<256x128xf32>
    %c0_17 = arith.constant 0 : index
    %c0_18 = arith.constant 0 : index
    %37 = vector.load %arg6[%c0_17, %c0_18] : memref<256x128xf32, #tpu.memory_space<vmem>>, vector<256x128xf32>
    tpu.vector_store %arg6[%c0_17, %c0_18], %36 {strides = array<i32>} : memref<256x128xf32, #tpu.memory_space<vmem>>, vector<256x128xf32>,
    return
  }
  func.func @transform_0(%arg0: i32) -> (i32, i32) {
    %c0_i32 = arith.constant 0 : i32
    %c0_i32_0 = arith.constant 0 : i32
    return %arg0, %c0_i32 : i32, i32
  }
  func.func @transform_1(%arg0: i32) -> (i32, i32) {
    %c0_i32 = arith.constant 0 : i32
    %c0_i32_0 = arith.constant 0 : i32
    %c0_i32_1 = arith.constant 0 : i32
    return %c0_i32, %c0_i32_0 : i32, i32
  }
  func.func @transform_2(%arg0: i32) -> (i32, i32) {
    %c0_i32 = arith.constant 0 : i32
    %c0_i32_0 = arith.constant 0 : i32
    %c0_i32_1 = arith.constant 0 : i32
    return %c0_i32, %c0_i32_0 : i32, i32
  }
  func.func @transform_3(%arg0: i32) -> (i32, i32) {
    %c0_i32 = arith.constant 0 : i32
    %c0_i32_0 = arith.constant 0 : i32
    %c0_i32_1 = arith.constant 0 : i32
    return %c0_i32, %c0_i32_0 : i32, i32
  }
  func.func @transform_4(%arg0: i32) -> (i32, i32) {
    %c0_i32 = arith.constant 0 : i32
    %c0_i32_0 = arith.constant 0 : i32
    %c0_i32_1 = arith.constant 0 : i32
    return %c0_i32, %c0_i32_0 : i32, i32
  }
  func.func @transform_5(%arg0: i32) -> (i32, i32) {
    %c0_i32 = arith.constant 0 : i32
    %c0_i32_0 = arith.constant 0 : i32
    return %arg0, %c0_i32 : i32, i32
  }
}

</mosaic_0001>

<bundles_post_ra>
// kernel: tpu_custom_call.1
= control target key start
LH: loop header
LB: loop body
LE: loop exit
PB: predicated region body
PF: predicated region fallthrough
CT: control target
= control target key end

     0   :  { %10 = vsyncpa [#allocation3], 0  ;;  %s2471_s0 = inlined_call_operand.vmem [shape: f32[512,192], index: 0, kind: input, shape index: {}]   ;;  %s2472_s1 = inlined_call_operand.vmem [shape: f32[192,128], index: 1, kind: input, shape index: {}]   ;;  %s2473_s2 = inlined_call_operand.vmem [shape: f32[1,128], index: 2, kind: input, shape index: {}]   ;;  %s2474_s3 = inlined_call_operand.vmem [shape: f32[1,128], index: 3, kind: input, shape index: {}]   ;;  %s2475_s4 = inlined_call_operand.vmem [shape: f32[1,128], index: 4, kind: input, shape index: {}]   ;;  %s2476_s5 = inlined_call_operand.hbm [shape: f32[512,128], index: 5, kind: output, shape index: {}]  }
   0x1   :  { %12 = vsyncpa [#allocation3 + $0x1], 0  ;;  %s1583_s18 = smov 0   ;;  %s1585_s19 = smov 0  }
   0x2   :  { %s1587_s20 = smov 0   ;;  %s1589_s21 = smov 0  }
   0x3 LB: > { %s1604_s22 = sadd.s32 4294967295, %s1547_s21   ;;  %s1283_s23 = sadd.s32 4294967294, %s1547_s21   ;;  %s1547_s21 = sphi %s1589_s21, %s2482_s21   ;;  %s1543_s20 = sphi %s1587_s20, %s2481_s20   ;;  %s1539_s19 = sphi %s1585_s19, %s2480_s19   ;;  %s1535_s18 = sphi %s1583_s18, %s2479_s18  }
   0x4   : > { %s1608_s24 = sadd.s32 1, %s1547_s21   ;;  %s135_s25 = sadd.s32 1, %s1543_s20 }
   0x5   : > { %s132_s26 = ssub.s32 %s1547_s21, %s1608_s24  ;;  %p145_p0 = scmp.ne.s32.totalorder %s1543_s20, %s1539_s19 }
   0x6   : > { %p133_p1 = scmp.eq.s32.totalorder %s132_s26, 0  ;;  %p146_p2 = scmp.eq.s32.totalorder %s1604_s22, 1 }
   0x7   : > { %p151_p3 = scmp.ne.s32.totalorder %s1539_s19, %s1535_s18  ;;  %p152_p4 = scmp.eq.s32.totalorder %s1283_s23, 1 }
   0x8   : > { %s1619_s27 = scalar_select %p133_p1, %s1543_s20, %s135_s25  }
   0x9   : > { %p1621_p5 = por %p146_p2, %p145_p0  ;;  %p1625_p6 = por %p152_p4, %p151_p3 }
   0xa   : > { %p1286_p7 = scmp.ge.s32.totalorder %s1547_s21, 1  ;;  %p192_p8 = scmp.lt.s32.totalorder %s1547_s21, 3 }
   0xc   : > { %p193_p9 = pnand %p1286_p7, %p192_p8 }
   0xd   : > { %s1288_s30 = sshll.u32 (!%p193_p9), %s1604_s22, 5  ;;  %s218_s14 = sand.u32 (!%p193_p9), 1, %s1539_s19  }
   0xe   : > { %196 = sbr.rel (%p193_p9) target bundleno = 656 (0x290), region = 40  ;;  %p222_p10 = scmp.lt.s32.totalorder (!%p193_p9), %s1288_s30, 63 }
   0xf   : > { %s1287_s17 = sshll.u32 (!%p193_p9), %s218_s14, 8  ;;  %s1332_s25 = sshll.u32 (!%p193_p9), %s1604_s22, 12 }
  0x10   : > { %s2295_s23 = scalar_lea.vmem (!%p193_p9), [#allocation2], %s1287_s17  ;;  %s2431_s8 = scalar_lea.sflag (!%p193_p9), [#allocation3], %s218_s14 }
  0x11   : > { %s1221_s26 = sshll.u32 (!%p193_p9), %s2295_s23, 4  ;;  %s1550_s9 = smov (!%p193_p9), [#allocation2]   ;;  %s2426_s26 = int_to_ptr.vmem [resolvable:$true] %s1221_s26 }
  0x12   : > { %s1487_s22 = scalar_lea.vmem (!%p193_p9), %s2426_s26, 4096  ;;  %s1491_s10 = sshll.u32 (!%p193_p9), %s1550_s9, 4  ;;  %s1492_s10 = int_to_ptr.vmem [resolvable:$false] %s1491_s10 }
  0x13   : > { %v308_v0 = vld [vmem:[%s2472_s1 + $0x78] sm:$0xff]  ;;  %v1549_v1 = vmov 0.0   ;;  %v307_v2 = vld [vmem:[%s2472_s1 + $0x70] sm:$0xff]  ;;  %v306_v3 = vld [vmem:[%s2472_s1 + $0x68] sm:$0xff]  ;;  %s2484_s30 = smov (!%p222_p10, %s1288_s30), 63  ;;  %vm324_vm0 = vcmask 523264   ;;  %p1488_p11 = scmp.ne.s32.totalorder %s2426_s26, %s1487_s22 }
  0x14   : > { %421 = vmatprep.subr.mxu0 %v1549_v1  ;;  %1333 = vmatprep.subr.mxu1 %v1549_v1  ;;  %v305_v4 = vld [vmem:[%s2472_s1 + $0x60] sm:$0xff]  ;;  %v304_v5 = vld [vmem:[%s2472_s1 + $0x58] sm:$0xff]  ;;  %v303_v6 = vld [vmem:[%s2472_s1 + $0x50] sm:$0xff]  ;;  %s1331_s16 = sshll.u32 %s2484_s30, 4  ;;  %s1493_s11 = scalar_lea.vmem %s1492_s10, 8192 }
  0x15   : > { %422 = vmatpush1.msra.mxu0 %v308_v0  ;;  %1357 = vmatpush1.msra.mxu1 %v308_v0  ;;  %v302_v7 = vld [vmem:[%s2472_s1 + $0x48] sm:$0xff]  ;;  %v301_v8 = vld [vmem:[%s2472_s1 + $0x40] sm:$0xff]  ;;  %v300_v9 = vld [vmem:[%s2472_s1 + $0x38] sm:$0xff]  ;;  %s1748_s7 = scalar_lea.vmem %s2471_s0, %s1331_s16  ;;  %p1489_p12 = pnand %p1488_p11, %p1621_p5 }
  0x16   : > { %423 = vmatprep.subr.mxu0 %v1549_v1  ;;  %1334 = vmatprep.subr.mxu1 %v1549_v1  ;;  %v299_v10 = vld [vmem:[%s2472_s1 + $0x30] sm:$0xff]  ;;  %v298_v11 = vld [vmem:[%s2472_s1 + $0x28] sm:$0xff]  ;;  %v297_v12 = vld [vmem:[%s2472_s1 + $0x20] sm:$0xff]  ;;  %p1494_p0 = scmp.lt.s32.totalorder %s2426_s26, %s1492_s10  ;;  %p1495_p1 = scmp.lt.s32.totalorder %s1493_s11, %s1487_s22 }
  0x17   : > { %424 = vmatpush1.msra.mxu0 %v307_v2  ;;  %1358 = vmatpush1.msra.mxu1 %v307_v2  ;;  %v296_v13 = vld [vmem:[%s2472_s1 + $0x18] sm:$0xff]  ;;  %v295_v14 = vld [vmem:[%s2472_s1 + $0x10] sm:$0xff]  ;;  %v294_v15 = vld [vmem:[%s2472_s1 + $0x8] sm:$0xff]  ;;  %p1490_p13 = pneg %p1489_p12 }
  0x18   : > { %425 = vmatprep.subr.mxu0 %v1549_v1  ;;  %1335 = vmatprep.subr.mxu1 %v1549_v1  ;;  %v293_v16 = vld [vmem:[%s2472_s1] sm:$0xff]  ;;  %v316_v17 = vld [vmem:[%s2472_s1 + $0xb8] sm:$0xff]  ;;  %v315_v18 = vld [vmem:[%s2472_s1 + $0xb0] sm:$0xff]  ;;  %p1496_p2 = por %p1495_p1, %p1494_p0 }
  0x19   : > { %426 = vmatpush1.msra.mxu0 %v306_v3  ;;  %1359 = vmatpush1.msra.mxu1 %v306_v3  ;;  %v314_v19 = vld [vmem:[%s2472_s1 + $0xa8] sm:$0xff]  ;;  %v313_v20 = vld [vmem:[%s2472_s1 + $0xa0] sm:$0xff]  ;;  %v312_v21 = vld [vmem:[%s2472_s1 + $0x98] sm:$0xff] }
  0x1a   : > { %427 = vmatprep.subr.mxu0 %v1549_v1  ;;  %1336 = vmatprep.subr.mxu1 %v1549_v1  ;;  %v311_v22 = vld [vmem:[%s2472_s1 + $0x90] sm:$0xff]  ;;  %v310_v23 = vld [vmem:[%s2472_s1 + $0x88] sm:$0xff]  ;;  %v309_v24 = vld [vmem:[%s2472_s1 + $0x80] sm:$0xff]  ;;  %p1497_p3 = pnand %p1496_p2, %p1490_p13 }
  0x1b   : > { %428 = vmatpush1.msra.mxu0 %v305_v4  ;;  %1360 = vmatpush1.msra.mxu1 %v305_v4  ;;  %v230_v25 = vld [vmem:[%s1748_s7 + $0x8] sm:$0xff]  ;;  %v229_v27 = vld [vmem:[%s1748_s7] sm:$0xff]  ;;  %v232_v29 = vld [vmem:[%s1748_s7 + $0x18] sm:$0xff] }
  0x1c   : > { %429 = vmatprep.subr.mxu0 %v1549_v1  ;;  %1337 = vmatprep.subr.mxu1 %v1549_v1  ;;  %v262_v26 = vld [vmem:[%s1748_s7 + $0x108] sm:$0xff]  ;;  %v261_v28 = vld [vmem:[%s1748_s7 + $0x100] sm:$0xff]  ;;  %v264_v30 = vld [vmem:[%s1748_s7 + $0x118] sm:$0xff] }
  0x1d   : > { %430 = vmatpush1.msra.mxu0 %v304_v5  ;;  %1361 = vmatpush1.msra.mxu1 %v304_v5  ;;  %v231_v31 = vld [vmem:[%s1748_s7 + $0x10] sm:$0xff]  ;;  %v234_v33 = vld [vmem:[%s1748_s7 + $0x28] sm:$0xff]  ;;  %v233_v35 = vld [vmem:[%s1748_s7 + $0x20] sm:$0xff] }
  0x1e   : > { %431 = vmatprep.subr.mxu0 %v1549_v1  ;;  %1338 = vmatprep.subr.mxu1 %v1549_v1  ;;  %v263_v32 = vld [vmem:[%s1748_s7 + $0x110] sm:$0xff]  ;;  %v266_v34 = vld [vmem:[%s1748_s7 + $0x128] sm:$0xff]  ;;  %v265_v36 = vld [vmem:[%s1748_s7 + $0x120] sm:$0xff] }
  0x1f   : > { %432 = vmatpush1.msra.mxu0 %v303_v6  ;;  %1362 = vmatpush1.msra.mxu1 %v303_v6  ;;  %v236_v37 = vld [vmem:[%s1748_s7 + $0x38] sm:$0xff]  ;;  %v235_v39 = vld [vmem:[%s1748_s7 + $0x30] sm:$0xff]  ;;  %v238_v41 = vld [vmem:[%s1748_s7 + $0x48] sm:$0xff] }
  0x20   : > { %433 = vmatprep.subr.mxu0 %v1549_v1  ;;  %1339 = vmatprep.subr.mxu1 %v1549_v1  ;;  %v268_v38 = vld [vmem:[%s1748_s7 + $0x138] sm:$0xff]  ;;  %v267_v40 = vld [vmem:[%s1748_s7 + $0x130] sm:$0xff]  ;;  %v270_v42 = vld [vmem:[%s1748_s7 + $0x148] sm:$0xff] }
  0x21   : > { %434 = vmatpush1.msra.mxu0 %v302_v7  ;;  %1363 = vmatpush1.msra.mxu1 %v302_v7  ;;  %v237_v43 = vld [vmem:[%s1748_s7 + $0x40] sm:$0xff]  ;;  %v240_v45 = vld [vmem:[%s1748_s7 + $0x58] sm:$0xff]  ;;  %v239_v47 = vld [vmem:[%s1748_s7 + $0x50] sm:$0xff] }
  0x22   : > { %435 = vmatprep.subr.mxu0 %v1549_v1  ;;  %1340 = vmatprep.subr.mxu1 %v1549_v1  ;;  %v269_v44 = vld [vmem:[%s1748_s7 + $0x140] sm:$0xff]  ;;  %v272_v46 = vld [vmem:[%s1748_s7 + $0x158] sm:$0xff]  ;;  %v271_v48 = vld [vmem:[%s1748_s7 + $0x150] sm:$0xff] }
  0x23   : > { %436 = vmatpush1.msra.mxu0 %v301_v8  ;;  %1364 = vmatpush1.msra.mxu1 %v301_v8  ;;  %v242_v49 = vld [vmem:[%s1748_s7 + $0x68] sm:$0xff]  ;;  %v241_v51 = vld [vmem:[%s1748_s7 + $0x60] sm:$0xff]  ;;  %v244_v53 = vld [vmem:[%s1748_s7 + $0x78] sm:$0xff] }
  0x24   : > { %437 = vmatprep.subr.mxu0 %v1549_v1  ;;  %1341 = vmatprep.subr.mxu1 %v1549_v1  ;;  %v274_v50 = vld [vmem:[%s1748_s7 + $0x168] sm:$0xff]  ;;  %v273_v52 = vld [vmem:[%s1748_s7 + $0x160] sm:$0xff]  ;;  %v276_v54 = vld [vmem:[%s1748_s7 + $0x178] sm:$0xff] }
  0x25   : > { %438 = vmatpush1.msra.mxu0 %v300_v9  ;;  %1365 = vmatpush1.msra.mxu1 %v300_v9  ;;  %v243_v55 = vld [vmem:[%s1748_s7 + $0x70] sm:$0xff]  ;;  %v246_v57 = vld [vmem:[%s1748_s7 + $0x88] sm:$0xff]  ;;  %v245_v59 = vld [vmem:[%s1748_s7 + $0x80] sm:$0xff] }
  0x26   : > { %439 = vmatprep.subr.mxu0 %v1549_v1  ;;  %1342 = vmatprep.subr.mxu1 %v1549_v1  ;;  %v275_v56 = vld [vmem:[%s1748_s7 + $0x170] sm:$0xff]  ;;  %v278_v58 = vld [vmem:[%s1748_s7 + $0x188] sm:$0xff]  ;;  %v277_v60 = vld [vmem:[%s1748_s7 + $0x180] sm:$0xff] }
  0x27   : > { %440 = vmatpush1.msra.mxu0 %v299_v10  ;;  %1366 = vmatpush1.msra.mxu1 %v299_v10  ;;  %v248_v61 = vld [vmem:[%s1748_s7 + $0x98] sm:$0xff]  ;;  %v247_v63 = vld [vmem:[%s1748_s7 + $0x90] sm:$0xff]  ;;  %v282_v2 = vld [vmem:[%s1748_s7 + $0x1a8] sm:$0xff] }
  0x28   : > { %441 = vmatprep.subr.mxu0 %v1549_v1  ;;  %1343 = vmatprep.subr.mxu1 %v1549_v1  ;;  %v280_v62 = vld [vmem:[%s1748_s7 + $0x198] sm:$0xff]  ;;  %v279_v0 = vld [vmem:[%s1748_s7 + $0x190] sm:$0xff]  ;;  %v249_v3 = vld [vmem:[%s1748_s7 + $0xa0] sm:$0xff] }
  0x29   : > { %442 = vmatpush1.msra.mxu0 %v298_v11  ;;  %1367 = vmatpush1.msra.mxu1 %v298_v11  ;;  %v281_v4 = vld [vmem:[%s1748_s7 + $0x1a0] sm:$0xff]  ;;  %v252_v5 = vld [vmem:[%s1748_s7 + $0xb8] sm:$0xff]  ;;  %v251_v7 = vld [vmem:[%s1748_s7 + $0xb0] sm:$0xff] }
  0x2a   : > { %443 = vmatprep.subr.mxu0 %v1549_v1  ;;  %1344 = vmatprep.subr.mxu1 %v1549_v1  ;;  %v284_v6 = vld [vmem:[%s1748_s7 + $0x1b8] sm:$0xff]  ;;  %v283_v8 = vld [vmem:[%s1748_s7 + $0x1b0] sm:$0xff]  ;;  %v254_v9 = vld [vmem:[%s1748_s7 + $0xc8] sm:$0xff] }
  0x2b   : > { %444 = vmatpush1.msra.mxu0 %v297_v12  ;;  %1368 = vmatpush1.msra.mxu1 %v297_v12  ;;  %v286_v10 = vld [vmem:[%s1748_s7 + $0x1c8] sm:$0xff]  ;;  %v253_v11 = vld [vmem:[%s1748_s7 + $0xc0] sm:$0xff] }
  0x2c   : > { %445 = vmatprep.subr.mxu0 %v1549_v1  ;;  %1345 = vmatprep.subr.mxu1 %v1549_v1  ;;  %v285_v12 = vld [vmem:[%s1748_s7 + $0x1c0] sm:$0xff] }
  0x2d   : > { %446 = vmatpush1.msra.mxu0 %v296_v13  ;;  %1369 = vmatpush1.msra.mxu1 %v296_v13  ;;  %v256_v13 = vld [vmem:[%s1748_s7 + $0xd8] sm:$0xff] }
  0x2e   : > { %447 = vmatprep.subr.mxu0 %v1549_v1  ;;  %1346 = vmatprep.subr.mxu1 %v1549_v1 }
  0x2f   : > { %448 = vmatpush1.msra.mxu0 %v295_v14  ;;  %1370 = vmatpush1.msra.mxu1 %v295_v14  ;;  %v288_v14 = vld [vmem:[%s1748_s7 + $0x1d8] sm:$0xff] }
  0x30   : > { %449 = vmatprep.subr.mxu0 %v1549_v1  ;;  %1347 = vmatprep.subr.mxu1 %v1549_v1 }
  0x31   : > { %450 = vmatpush1.msra.mxu0 %v294_v15  ;;  %1371 = vmatpush1.msra.mxu1 %v294_v15  ;;  %v255_v15 = vld [vmem:[%s1748_s7 + $0xd0] sm:$0xff] }
  0x32   : > { %451 = vmatprep.subr.mxu0 %v1549_v1  ;;  %1348 = vmatprep.subr.mxu1 %v1549_v1 }
  0x33   : > { %452 = vmatpush1.msra.mxu0 %v293_v16  ;;  %1372 = vmatpush1.msra.mxu1 %v293_v16  ;;  %v287_v16 = vld [vmem:[%s1748_s7 + $0x1d0] sm:$0xff] }
  0x34   : > { %469 = vmatprep.subr.mxu0 %v1549_v1  ;;  %1349 = vmatprep.subr.mxu1 %v1549_v1 }
  0x35   : > { %470 = vmatpush2.msra.mxu0 %v316_v17  ;;  %1373 = vmatpush2.msra.mxu1 %v316_v17  ;;  %v258_v17 = vld [vmem:[%s1748_s7 + $0xe8] sm:$0xff] }
  0x36   : > { %471 = vmatprep.subr.mxu0 %v1549_v1  ;;  %1350 = vmatprep.subr.mxu1 %v1549_v1 }
  0x37   : > { %472 = vmatpush2.msra.mxu0 %v315_v18  ;;  %1374 = vmatpush2.msra.mxu1 %v315_v18  ;;  %v290_v18 = vld [vmem:[%s1748_s7 + $0x1e8] sm:$0xff] }
  0x38   : > { %473 = vmatprep.subr.mxu0 %v1549_v1  ;;  %1351 = vmatprep.subr.mxu1 %v1549_v1 }
  0x39   : > { %474 = vmatpush2.msra.mxu0 %v314_v19  ;;  %1375 = vmatpush2.msra.mxu1 %v314_v19  ;;  %v257_v19 = vld [vmem:[%s1748_s7 + $0xe0] sm:$0xff] }
  0x3a   : > { %475 = vmatprep.subr.mxu0 %v1549_v1  ;;  %1352 = vmatprep.subr.mxu1 %v1549_v1 }
  0x3b   : > { %476 = vmatpush2.msra.mxu0 %v313_v20  ;;  %1376 = vmatpush2.msra.mxu1 %v313_v20  ;;  %v289_v20 = vld [vmem:[%s1748_s7 + $0x1e0] sm:$0xff] }
  0x3c   : > { %477 = vmatprep.subr.mxu0 %v1549_v1  ;;  %1353 = vmatprep.subr.mxu1 %v1549_v1 }
  0x3d   : > { %478 = vmatpush2.msra.mxu0 %v312_v21  ;;  %1377 = vmatpush2.msra.mxu1 %v312_v21  ;;  %v260_v21 = vld [vmem:[%s1748_s7 + $0xf8] sm:$0xff] }
  0x3e   : > { %479 = vmatprep.subr.mxu0 %v1549_v1  ;;  %1354 = vmatprep.subr.mxu1 %v1549_v1 }
  0x3f   : > { %480 = vmatpush2.msra.mxu0 %v311_v22  ;;  %1378 = vmatpush2.msra.mxu1 %v311_v22  ;;  %v292_v22 = vld [vmem:[%s1748_s7 + $0x1f8] sm:$0xff] }
  0x40   : > { %481 = vmatprep.subr.mxu0 %v1549_v1  ;;  %1355 = vmatprep.subr.mxu1 %v1549_v1 }
  0x41   : > { %482 = vmatpush2.msra.mxu0 %v310_v23  ;;  %1379 = vmatpush2.msra.mxu1 %v310_v23  ;;  %v259_v23 = vld [vmem:[%s1748_s7 + $0xf0] sm:$0xff] }
  0x42   : > { %483 = vmatprep.subr.mxu0 %v1549_v1  ;;  %1356 = vmatprep.subr.mxu1 %v1549_v1  ;;  %v250_v1 = vld [vmem:[%s1748_s7 + $0xa8] sm:$0xff] }
  0x43   : > { %484 = vmatpush2.msra.mxu0 %v309_v24  ;;  %1380 = vmatpush2.msra.mxu1 %v309_v24  ;;  %v291_v24 = vld [vmem:[%s1748_s7 + $0x1f0] sm:$0xff]  ;;  %s2424_s7 = scalar_lea.hbm %s2476_s5, %s1332_s25 }
  0x44   : > { %1292 = vmatprep.mubr.msk.f32.mxu0 %vm324_vm0, %v230_v25  ;;  %1308 = vmatprep.mubr.msk.f32.mxu1 %vm324_vm0, %v262_v26  ;;  %v648_v25 = vlaneseq }
  0x45   : > { %486 = vmatmul.mubr.f32.vlgmr.msra.gmra.mxu0 %v229_v27  ;;  %566 = vmatmul.mubr.f32.vlgmr.msra.gmra.mxu1 %v261_v28  ;;  %v1858_v27 = vld [vmem:[%s2473_s2] ss:$0 sm:$0xff] }
  0x46   : > { %1293 = vmatprep.mubr.msk.f32.mxu0 %vm324_vm0, %v232_v29  ;;  %1309 = vmatprep.mubr.msk.f32.mxu1 %vm324_vm0, %v264_v30  ;;  %v1853_v26 = vand.u32 127, %v648_v25 }
  0x48   : > { %vm650_vm1 = vcmp.lt.s32.totalorder %v1853_v26, 80 }
  0x49   : > { %491 = vmatmul.mubr.f32.gmra.mxu0 %v231_v31  ;;  %571 = vmatmul.mubr.f32.gmra.mxu1 %v263_v32 }
  0x4a   : > { %1294 = vmatprep.mubr.msk.f32.mxu0 %vm324_vm0, %v234_v33  ;;  %1310 = vmatprep.mubr.msk.f32.mxu1 %vm324_vm0, %v266_v34 }
  0x4d   : > { %496 = vmatmul.mubr.f32.gmra.mxu0 %v233_v35  ;;  %576 = vmatmul.mubr.f32.gmra.mxu1 %v265_v36 }
  0x4e   : > { %1295 = vmatprep.mubr.msk.f32.mxu0 %vm324_vm0, %v236_v37  ;;  %1311 = vmatprep.mubr.msk.f32.mxu1 %vm324_vm0, %v268_v38 }
  0x51   : > { %501 = vmatmul.mubr.f32.gmra.mxu0 %v235_v39  ;;  %581 = vmatmul.mubr.f32.gmra.mxu1 %v267_v40 }
  0x52   : > { %1296 = vmatprep.mubr.msk.f32.mxu0 %vm324_vm0, %v238_v41  ;;  %1312 = vmatprep.mubr.msk.f32.mxu1 %vm324_vm0, %v270_v42 }
  0x55   : > { %506 = vmatmul.mubr.f32.gmra.mxu0 %v237_v43  ;;  %586 = vmatmul.mubr.f32.gmra.mxu1 %v269_v44 }
  0x56   : > { %1297 = vmatprep.mubr.msk.f32.mxu0 %vm324_vm0, %v240_v45  ;;  %1313 = vmatprep.mubr.msk.f32.mxu1 %vm324_vm0, %v272_v46 }
  0x59   : > { %511 = vmatmul.mubr.f32.gmra.mxu0 %v239_v47  ;;  %591 = vmatmul.mubr.f32.gmra.mxu1 %v271_v48 }
  0x5a   : > { %1298 = vmatprep.mubr.msk.f32.mxu0 %vm324_vm0, %v242_v49  ;;  %1314 = vmatprep.mubr.msk.f32.mxu1 %vm324_vm0, %v274_v50 }
  0x5d   : > { %516 = vmatmul.mubr.f32.gmra.mxu0 %v241_v51  ;;  %596 = vmatmul.mubr.f32.gmra.mxu1 %v273_v52 }
  0x5e   : > { %1299 = vmatprep.mubr.msk.f32.mxu0 %vm324_vm0, %v244_v53  ;;  %1315 = vmatprep.mubr.msk.f32.mxu1 %vm324_vm0, %v276_v54 }
  0x61   : > { %521 = vmatmul.mubr.f32.gmra.mxu0 %v243_v55  ;;  %601 = vmatmul.mubr.f32.gmra.mxu1 %v275_v56 }
  0x62   : > { %1300 = vmatprep.mubr.msk.f32.mxu0 %vm324_vm0, %v246_v57  ;;  %1316 = vmatprep.mubr.msk.f32.mxu1 %vm324_vm0, %v278_v58 }
  0x65   : > { %526 = vmatmul.mubr.f32.gmra.mxu0 %v245_v59  ;;  %606 = vmatmul.mubr.f32.gmra.mxu1 %v277_v60 }
  0x66   : > { %1301 = vmatprep.mubr.msk.f32.mxu0 %vm324_vm0, %v248_v61  ;;  %1317 = vmatprep.mubr.msk.f32.mxu1 %vm324_vm0, %v280_v62 }
  0x69   : > { %531 = vmatmul.mubr.f32.gmra.mxu0 %v247_v63  ;;  %611 = vmatmul.mubr.f32.gmra.mxu1 %v279_v0 }
  0x6a   : > { %1302 = vmatprep.mubr.msk.f32.mxu0 %vm324_vm0, %v250_v1  ;;  %1318 = vmatprep.mubr.msk.f32.mxu1 %vm324_vm0, %v282_v2 }
  0x6d   : > { %536 = vmatmul.mubr.f32.gmra.mxu0 %v249_v3  ;;  %616 = vmatmul.mubr.f32.gmra.mxu1 %v281_v4 }
  0x6e   : > { %1303 = vmatprep.mubr.msk.f32.mxu0 %vm324_vm0, %v252_v5  ;;  %1319 = vmatprep.mubr.msk.f32.mxu1 %vm324_vm0, %v284_v6 }
  0x71   : > { %541 = vmatmul.mubr.f32.gmra.mxu0 %v251_v7  ;;  %621 = vmatmul.mubr.f32.gmra.mxu1 %v283_v8 }
  0x72   : > { %1304 = vmatprep.mubr.msk.f32.mxu0 %vm324_vm0, %v254_v9  ;;  %1320 = vmatprep.mubr.msk.f32.mxu1 %vm324_vm0, %v286_v10 }
  0x75   : > { %546 = vmatmul.mubr.f32.gmra.mxu0 %v253_v11  ;;  %626 = vmatmul.mubr.f32.gmra.mxu1 %v285_v12 }
  0x76   : > { %1305 = vmatprep.mubr.msk.f32.mxu0 %vm324_vm0, %v256_v13  ;;  %1321 = vmatprep.mubr.msk.f32.mxu1 %vm324_vm0, %v288_v14 }
  0x79   : > { %551 = vmatmul.mubr.f32.gmra.mxu0 %v255_v15  ;;  %631 = vmatmul.mubr.f32.gmra.mxu1 %v287_v16 }
  0x7a   : > { %1306 = vmatprep.mubr.msk.f32.mxu0 %vm324_vm0, %v258_v17  ;;  %1322 = vmatprep.mubr.msk.f32.mxu1 %vm324_vm0, %v290_v18 }
  0x7d   : > { %556 = vmatmul.mubr.f32.gmra.mxu0 %v257_v19  ;;  %636 = vmatmul.mubr.f32.gmra.mxu1 %v289_v20 }
  0x7e   : > { %1307 = vmatprep.mubr.msk.f32.mxu0 %vm324_vm0, %v260_v21  ;;  %1323 = vmatprep.mubr.msk.f32.mxu1 %vm324_vm0, %v292_v22 }
  0x81   : > { %561 = vmatmul.mubr.f32.gmra.mxu0 %v259_v23  ;;  %641 = vmatmul.mubr.f32.gmra.mxu1 %v291_v24 }
 0x105   : > { %v487_v28 = vpop.f32.mrf.mxu0  ;;  %v567_v29 = vpop.f32.mrf.mxu1 }
 0x106   : > { %v1862_v30 = vadd.f32 %v1858_v27, %v487_v28  ;;  %v1865_v31 = vadd.f32 %v1858_v27, %v567_v29 }
 0x107   : > { %v489_v32 = vpop.f32.mrf.mxu0  ;;  %v569_v33 = vpop.f32.mrf.mxu1 }
 0x108   : > { %v651_v34 = vsel %vm650_vm1, %v1862_v30, 0.0  ;;  %v667_v39 = vsel %vm650_vm1, %v1865_v31, 0.0 }
 0x109   : > { %v492_v35 = vpop.f32.mrf.mxu0  ;;  %v572_v36 = vpop.f32.mrf.mxu1  ;;  %683 = vadd.xlane.f32.xlu0 %v651_v34 }
 0x10a   : > { %v1871_v37 = vadd.f32 %v1858_v27, %v492_v35  ;;  %v1874_v38 = vadd.f32 %v1858_v27, %v572_v36 }
 0x10b   : > { %v494_v40 = vpop.f32.mrf.mxu0  ;;  %v574_v41 = vpop.f32.mrf.mxu1 }
 0x10c   : > { %v668_v42 = vsel %vm650_vm1, %v1874_v38, 0.0  ;;  %v652_v47 = vsel %vm650_vm1, %v1871_v37, 0.0 }
 0x10d   : > { %717 = vadd.xlane.f32.xlu1 %v668_v42  ;;  %v497_v43 = vpop.f32.mrf.mxu0  ;;  %715 = vadd.xlane.f32.xlu0 %v667_v39  ;;  %v577_v44 = vpop.f32.mrf.mxu1 }
 0x10e   : > { %v1883_v45 = vadd.f32 %v1858_v27, %v497_v43  ;;  %v1886_v46 = vadd.f32 %v1858_v27, %v577_v44 }
 0x10f   : > { %v499_v48 = vpop.f32.mrf.mxu0  ;;  %v579_v49 = vpop.f32.mrf.mxu1 }
 0x110   : > { %v653_v50 = vsel %vm650_vm1, %v1883_v45, 0.0  ;;  %v669_v55 = vsel %vm650_vm1, %v1886_v46, 0.0 }
 0x111   : > { %v502_v51 = vpop.f32.mrf.mxu0  ;;  %687 = vadd.xlane.f32.xlu1 %v653_v50  ;;  %685 = vadd.xlane.f32.xlu0 %v652_v47  ;;  %v582_v52 = vpop.f32.mrf.mxu1 }
 0x112   : > { %v1895_v53 = vadd.f32 %v1858_v27, %v502_v51  ;;  %v1898_v54 = vadd.f32 %v1858_v27, %v582_v52 }
 0x113   : > { %v504_v56 = vpop.f32.mrf.mxu0  ;;  %v584_v57 = vpop.f32.mrf.mxu1 }
 0x114   : > { %v654_v58 = vsel %vm650_vm1, %v1895_v53, 0.0  ;;  %v670_v63 = vsel %vm650_vm1, %v1898_v54, 0.0 }
 0x115   : > { %v507_v59 = vpop.f32.mrf.mxu0  ;;  %689 = vadd.xlane.f32.xlu1 %v654_v58  ;;  %719 = vadd.xlane.f32.xlu0 %v669_v55  ;;  %v587_v60 = vpop.f32.mrf.mxu1 }
 0x116   : > { %v1907_v61 = vadd.f32 %v1858_v27, %v507_v59  ;;  %v1910_v62 = vadd.f32 %v1858_v27, %v587_v60 }
 0x117   : > { %v509_v0 = vpop.f32.mrf.mxu0  ;;  %v589_v1 = vpop.f32.mrf.mxu1 }
 0x118   : > { %v655_v2 = vsel %vm650_vm1, %v1907_v61, 0.0  ;;  %v671_v7 = vsel %vm650_vm1, %v1910_v62, 0.0 }
 0x119   : > { %v512_v3 = vpop.f32.mrf.mxu0  ;;  %721 = vadd.xlane.f32.xlu1 %v670_v63  ;;  %691 = vadd.xlane.f32.xlu0 %v655_v2  ;;  %v592_v4 = vpop.f32.mrf.mxu1 }
 0x11a   : > { %v1919_v5 = vadd.f32 %v1858_v27, %v512_v3  ;;  %v1922_v6 = vadd.f32 %v1858_v27, %v592_v4 }
 0x11b   : > { %v514_v8 = vpop.f32.mrf.mxu0  ;;  %v594_v9 = vpop.f32.mrf.mxu1 }
 0x11c   : > { %v656_v10 = vsel %vm650_vm1, %v1919_v5, 0.0  ;;  %v672_v15 = vsel %vm650_vm1, %v1922_v6, 0.0 }
 0x11d   : > { %v517_v11 = vpop.f32.mrf.mxu0  ;;  %693 = vadd.xlane.f32.xlu1 %v656_v10  ;;  %723 = vadd.xlane.f32.xlu0 %v671_v7  ;;  %v597_v12 = vpop.f32.mrf.mxu1 }
 0x11e   : > { %v1931_v13 = vadd.f32 %v1858_v27, %v517_v11  ;;  %v1934_v14 = vadd.f32 %v1858_v27, %v597_v12 }
 0x11f   : > { %v519_v16 = vpop.f32.mrf.mxu0  ;;  %v599_v17 = vpop.f32.mrf.mxu1 }
 0x120   : > { %v657_v18 = vsel %vm650_vm1, %v1931_v13, 0.0  ;;  %v673_v23 = vsel %vm650_vm1, %v1934_v14, 0.0 }
 0x121   : > { %v522_v19 = vpop.f32.mrf.mxu0  ;;  %725 = vadd.xlane.f32.xlu1 %v672_v15  ;;  %695 = vadd.xlane.f32.xlu0 %v657_v18  ;;  %v602_v20 = vpop.f32.mrf.mxu1 }
 0x122   : > { %v1943_v21 = vadd.f32 %v1858_v27, %v522_v19  ;;  %v1946_v22 = vadd.f32 %v1858_v27, %v602_v20 }
 0x123   : > { %v524_v24 = vpop.f32.mrf.mxu0  ;;  %v604_v25 = vpop.f32.mrf.mxu1 }
 0x124   : > { %v658_v28 = vsel %vm650_vm1, %v1943_v21, 0.0  ;;  %v674_v35 = vsel %vm650_vm1, %v1946_v22, 0.0 }
 0x125   : > { %v527_v29 = vpop.f32.mrf.mxu0  ;;  %697 = vadd.xlane.f32.xlu1 %v658_v28  ;;  %727 = vadd.xlane.f32.xlu0 %v673_v23  ;;  %v607_v32 = vpop.f32.mrf.mxu1 }
 0x126   : > { %v1955_v33 = vadd.f32 %v1858_v27, %v527_v29  ;;  %v1958_v34 = vadd.f32 %v1858_v27, %v607_v32 }
 0x127   : > { %v529_v36 = vpop.f32.mrf.mxu0  ;;  %v609_v39 = vpop.f32.mrf.mxu1 }
 0x128   : > { %v659_v40 = vsel %vm650_vm1, %v1955_v33, 0.0  ;;  %v675_v47 = vsel %vm650_vm1, %v1958_v34, 0.0 }
 0x129   : > { %v532_v41 = vpop.f32.mrf.mxu0  ;;  %729 = vadd.xlane.f32.xlu1 %v674_v35  ;;  %699 = vadd.xlane.f32.xlu0 %v659_v40  ;;  %v612_v42 = vpop.f32.mrf.mxu1 }
 0x12a   : > { %v1967_v43 = vadd.f32 %v1858_v27, %v532_v41  ;;  %v1970_v44 = vadd.f32 %v1858_v27, %v612_v42 }
 0x12b   : > { %v534_v48 = vpop.f32.mrf.mxu0  ;;  %v614_v49 = vpop.f32.mrf.mxu1 }
 0x12c   : > { %v660_v50 = vsel %vm650_vm1, %v1967_v43, 0.0  ;;  %v676_v57 = vsel %vm650_vm1, %v1970_v44, 0.0 }
 0x12d   : > { %v537_v51 = vpop.f32.mrf.mxu0  ;;  %701 = vadd.xlane.f32.xlu1 %v660_v50  ;;  %731 = vadd.xlane.f32.xlu0 %v675_v47  ;;  %v617_v52 = vpop.f32.mrf.mxu1 }
 0x12e   : > { %v1979_v55 = vadd.f32 %v1858_v27, %v537_v51  ;;  %v1982_v56 = vadd.f32 %v1858_v27, %v617_v52 }
 0x12f   : > { %v539_v58 = vpop.f32.mrf.mxu0  ;;  %v619_v59 = vpop.f32.mrf.mxu1 }
 0x130   : > { %v661_v60 = vsel %vm650_vm1, %v1979_v55, 0.0  ;;  %v677_v3 = vsel %vm650_vm1, %v1982_v56, 0.0 }
 0x131   : > { %v542_v63 = vpop.f32.mrf.mxu0  ;;  %733 = vadd.xlane.f32.xlu1 %v676_v57  ;;  %703 = vadd.xlane.f32.xlu0 %v661_v60  ;;  %v622_v0 = vpop.f32.mrf.mxu1 }
 0x132   : > { %v1991_v1 = vadd.f32 %v1858_v27, %v542_v63  ;;  %v1994_v2 = vadd.f32 %v1858_v27, %v622_v0 }
 0x133   : > { %v544_v4 = vpop.f32.mrf.mxu0  ;;  %v624_v7 = vpop.f32.mrf.mxu1 }
 0x134   : > { %v662_v8 = vsel %vm650_vm1, %v1991_v1, 0.0  ;;  %v678_v15 = vsel %vm650_vm1, %v1994_v2, 0.0 }
 0x135   : > { %v547_v9 = vpop.f32.mrf.mxu0  ;;  %705 = vadd.xlane.f32.xlu1 %v662_v8  ;;  %735 = vadd.xlane.f32.xlu0 %v677_v3  ;;  %v627_v10 = vpop.f32.mrf.mxu1 }
 0x136   : > { %v2003_v11 = vadd.f32 %v1858_v27, %v547_v9  ;;  %v2006_v12 = vadd.f32 %v1858_v27, %v627_v10 }
 0x137   : > { %v549_v16 = vpop.f32.mrf.mxu0  ;;  %v629_v17 = vpop.f32.mrf.mxu1 }
 0x138   : > { %v663_v18 = vsel %vm650_vm1, %v2003_v11, 0.0  ;;  %v679_v25 = vsel %vm650_vm1, %v2006_v12, 0.0 }
 0x139   : > { %v552_v19 = vpop.f32.mrf.mxu0  ;;  %737 = vadd.xlane.f32.xlu1 %v678_v15  ;;  %707 = vadd.xlane.f32.xlu0 %v663_v18  ;;  %v632_v20 = vpop.f32.mrf.mxu1 }
 0x13a   : > { %v2015_v23 = vadd.f32 %v1858_v27, %v552_v19  ;;  %v2018_v24 = vadd.f32 %v1858_v27, %v632_v20 }
 0x13b   : > { %v554_v28 = vpop.f32.mrf.mxu0  ;;  %v634_v29 = vpop.f32.mrf.mxu1 }
 0x13c   : > { %v664_v32 = vsel %vm650_vm1, %v2015_v23, 0.0  ;;  %v680_v41 = vsel %vm650_vm1, %v2018_v24, 0.0 }
 0x13d   : > { %v557_v35 = vpop.f32.mrf.mxu0  ;;  %709 = vadd.xlane.f32.xlu1 %v664_v32  ;;  %739 = vadd.xlane.f32.xlu0 %v679_v25  ;;  %v637_v36 = vpop.f32.mrf.mxu1 }
 0x13e   : > { %v2027_v39 = vadd.f32 %v1858_v27, %v557_v35  ;;  %v2030_v40 = vadd.f32 %v1858_v27, %v637_v36 }
 0x13f   : > { %v559_v42 = vpop.f32.mrf.mxu0  ;;  %v639_v47 = vpop.f32.mrf.mxu1 }
 0x140   : > { %v665_v48 = vsel %vm650_vm1, %v2027_v39, 0.0  ;;  %v681_v57 = vsel %vm650_vm1, %v2030_v40, 0.0 }
 0x141   : > { %v562_v49 = vpop.f32.mrf.mxu0  ;;  %741 = vadd.xlane.f32.xlu1 %v680_v41  ;;  %711 = vadd.xlane.f32.xlu0 %v665_v48  ;;  %v642_v50 = vpop.f32.mrf.mxu1 }
 0x142   : > { %v2039_v51 = vadd.f32 %v1858_v27, %v562_v49  ;;  %v2042_v52 = vadd.f32 %v1858_v27, %v642_v50 }
 0x143   : > { %v564_v58 = vpop.f32.mrf.mxu0  ;;  %v644_v59 = vpop.f32.mrf.mxu1 }
 0x144   : > { %v666_v60 = vsel %vm650_vm1, %v2039_v51, 0.0  ;;  %v682_v63 = vsel %vm650_vm1, %v2042_v52, 0.0 }
 0x145   : > { %713 = vadd.xlane.f32.xlu1 %v666_v60  ;;  %743 = vadd.xlane.f32.xlu0 %v681_v57 }
 0x149   : > { %745 = vadd.xlane.f32.xlu1 %v682_v63 }
 0x192   : > { %v684_v0 = vpop.xlane.xlu0 %683 }
 0x193   : > { %v747_v27 = vmul.f32 0.0125, %v684_v0 }
 0x195   : > { %v779_v3 = vsub.f32 %v1862_v30, %v747_v27 }
 0x196   : > { %v718_v4 = vpop.xlane.xlu1 %717  ;;  %v716_v7 = vpop.xlane.xlu0 %715 }
 0x197   : > { %v763_v8 = vmul.f32 0.0125, %v716_v7  ;;  %v2056_v9 = vsel %vm650_vm1, %v779_v3, 0.0  ;;  %v764_v15 = vmul.f32 0.0125, %v718_v4 }
 0x198   : > { %v843_v10 = vmul.f32 %v2056_v9, %v2056_v9 }
 0x199   : > { %v795_v16 = vsub.f32 %v1865_v31, %v763_v8  ;;  %v796_v28 = vsub.f32 %v1874_v38, %v764_v15 }
 0x19a   : > { %v688_v17 = vpop.xlane.xlu1 %687  ;;  %875 = vadd.xlane.f32.xlu0 %v843_v10  ;;  %v686_v18 = vpop.xlane.xlu0 %685 }
 0x19b   : > { %v749_v19 = vmul.f32 0.0125, %v688_v17  ;;  %v748_v20 = vmul.f32 0.0125, %v686_v18  ;;  %v2063_v30 = vsel %vm650_vm1, %v795_v16, 0.0  ;;  %v2086_v49 = vsel %vm650_vm1, %v796_v28, 0.0 }
 0x19c   : > { %v859_v25 = vmul.f32 %v2063_v30, %v2063_v30  ;;  %v860_v63 = vmul.f32 %v2086_v49, %v2086_v49 }
 0x19d   : > { %v781_v29 = vsub.f32 %v1883_v45, %v749_v19  ;;  %v780_v32 = vsub.f32 %v1871_v37, %v748_v20 }
 0x19e   : > { %v690_v35 = vpop.xlane.xlu1 %689  ;;  %907 = vadd.xlane.f32.xlu0 %v859_v25  ;;  %v720_v31 = vpop.xlane.xlu0 %719 }
 0x19f   : > { %v750_v36 = vmul.f32 0.0125, %v690_v35  ;;  %v765_v41 = vmul.f32 0.0125, %v720_v31  ;;  %v2072_v42 = vsel %vm650_vm1, %v781_v29, 0.0  ;;  %v2076_v47 = vsel %vm650_vm1, %v780_v32, 0.0 }
 0x1a0   : > { %v845_v38 = vmul.f32 %v2072_v42, %v2072_v42  ;;  %v844_v45 = vmul.f32 %v2076_v47, %v2076_v47 }
 0x1a1   : > { %v782_v37 = vsub.f32 %v1895_v53, %v750_v36  ;;  %v797_v48 = vsub.f32 %v1886_v46, %v765_v41 }
 0x1a2   : > { %v722_v50 = vpop.xlane.xlu1 %721  ;;  %879 = vadd.xlane.f32.xlu0 %v845_v38  ;;  %877 = vadd.xlane.f32.xlu1 %v844_v45  ;;  %v692_v57 = vpop.xlane.xlu0 %691 }
 0x1a3   : > { %v766_v58 = vmul.f32 0.0125, %v722_v50  ;;  %v751_v59 = vmul.f32 0.0125, %v692_v57  ;;  %v2090_v60 = vsel %vm650_vm1, %v797_v48, 0.0  ;;  %v2100_v27 = vsel %vm650_vm1, %v782_v37, 0.0 }
 0x1a4   : > { %v861_v46 = vmul.f32 %v2090_v60, %v2090_v60  ;;  %v846_v15 = vmul.f32 %v2100_v27, %v2100_v27 }
 0x1a5   : > { %v798_v53 = vsub.f32 %v1898_v54, %v766_v58  ;;  %v783_v0 = vsub.f32 %v1907_v61, %v751_v59 }
 0x1a6   : > { %v694_v3 = vpop.xlane.xlu1 %693  ;;  %909 = vadd.xlane.f32.xlu1 %v860_v63  ;;  %911 = vadd.xlane.f32.xlu0 %v861_v46  ;;  %v724_v4 = vpop.xlane.xlu0 %723 }
 0x1a7   : > { %v752_v7 = vmul.f32 0.0125, %v694_v3  ;;  %v767_v8 = vmul.f32 0.0125, %v724_v4  ;;  %v2104_v10 = vsel %vm650_vm1, %v783_v0, 0.0  ;;  %v2114_v17 = vsel %vm650_vm1, %v798_v53, 0.0 }
 0x1a8   : > { %v847_v54 = vmul.f32 %v2104_v10, %v2104_v10  ;;  %v862_v29 = vmul.f32 %v2114_v17, %v2114_v17 }
 0x1a9   : > { %v784_v61 = vsub.f32 %v1919_v5, %v752_v7  ;;  %v799_v16 = vsub.f32 %v1910_v62, %v767_v8 }
 0x1aa   : > { %v726_v18 = vpop.xlane.xlu1 %725  ;;  %881 = vadd.xlane.f32.xlu1 %v846_v15  ;;  %883 = vadd.xlane.f32.xlu0 %v847_v54  ;;  %v696_v19 = vpop.xlane.xlu0 %695 }
 0x1ab   : > { %v768_v20 = vmul.f32 0.0125, %v726_v18  ;;  %v753_v25 = vmul.f32 0.0125, %v696_v19  ;;  %v2118_v28 = vsel %vm650_vm1, %v799_v16, 0.0  ;;  %v2128_v35 = vsel %vm650_vm1, %v784_v61, 0.0 }
 0x1ac   : > { %v863_v62 = vmul.f32 %v2118_v28, %v2118_v28  ;;  %v848_v37 = vmul.f32 %v2128_v35, %v2128_v35 }
 0x1ad   : > { %v800_v5 = vsub.f32 %v1922_v6, %v768_v20  ;;  %v785_v32 = vsub.f32 %v1931_v13, %v753_v25 }
 0x1ae   : > { %v698_v31 = vpop.xlane.xlu1 %697  ;;  %913 = vadd.xlane.f32.xlu1 %v862_v29  ;;  %915 = vadd.xlane.f32.xlu0 %v863_v62  ;;  %v728_v36 = vpop.xlane.xlu0 %727 }
 0x1af   : > { %v754_v41 = vmul.f32 0.0125, %v698_v31  ;;  %v769_v38 = vmul.f32 0.0125, %v728_v36  ;;  %v2132_v45 = vsel %vm650_vm1, %v785_v32, 0.0  ;;  %v2142_v50 = vsel %vm650_vm1, %v800_v5, 0.0 }
 0x1b0   : > { %v849_v6 = vmul.f32 %v2132_v45, %v2132_v45  ;;  %v864_v53 = vmul.f32 %v2142_v50, %v2142_v50 }
 0x1b1   : > { %v786_v13 = vsub.f32 %v1943_v21, %v754_v41  ;;  %v801_v48 = vsub.f32 %v1934_v14, %v769_v38 }
 0x1b2   : > { %v730_v57 = vpop.xlane.xlu1 %729  ;;  %885 = vadd.xlane.f32.xlu1 %v848_v37  ;;  %887 = vadd.xlane.f32.xlu0 %v849_v6  ;;  %v700_v58 = vpop.xlane.xlu0 %699 }
 0x1b3   : > { %v770_v59 = vmul.f32 0.0125, %v730_v57  ;;  %v755_v63 = vmul.f32 0.0125, %v700_v58  ;;  %v2146_v46 = vsel %vm650_vm1, %v801_v48, 0.0  ;;  %v2156_v3 = vsel %vm650_vm1, %v786_v13, 0.0 }
 0x1b4   : > { %v865_v14 = vmul.f32 %v2146_v46, %v2146_v46  ;;  %v850_v61 = vmul.f32 %v2156_v3, %v2156_v3 }
 0x1b5   : > { %v802_v21 = vsub.f32 %v1946_v22, %v770_v59  ;;  %v787_v0 = vsub.f32 %v1955_v33, %v755_v63 }
 0x1b6   : > { %v702_v4 = vpop.xlane.xlu1 %701  ;;  %917 = vadd.xlane.f32.xlu1 %v864_v53  ;;  %919 = vadd.xlane.f32.xlu0 %v865_v14  ;;  %v732_v7 = vpop.xlane.xlu0 %731 }
 0x1b7   : > { %v756_v8 = vmul.f32 0.0125, %v702_v4  ;;  %v771_v15 = vmul.f32 0.0125, %v732_v7  ;;  %v2160_v54 = vsel %vm650_vm1, %v787_v0, 0.0  ;;  %v2170_v18 = vsel %vm650_vm1, %v802_v21, 0.0 }
 0x1b8   : > { %v851_v22 = vmul.f32 %v2160_v54, %v2160_v54  ;;  %v866_v5 = vmul.f32 %v2170_v18, %v2170_v18 }
 0x1b9   : > { %v788_v33 = vsub.f32 %v1967_v43, %v756_v8  ;;  %v803_v16 = vsub.f32 %v1958_v34, %v771_v15 }
 0x1ba   : > { %v734_v19 = vpop.xlane.xlu1 %733  ;;  %889 = vadd.xlane.f32.xlu1 %v850_v61  ;;  %891 = vadd.xlane.f32.xlu0 %v851_v22  ;;  %v704_v20 = vpop.xlane.xlu0 %703 }
 0x1bb   : > { %v772_v25 = vmul.f32 0.0125, %v734_v19  ;;  %v757_v29 = vmul.f32 0.0125, %v704_v20  ;;  %v2174_v62 = vsel %vm650_vm1, %v803_v16, 0.0  ;;  %v2184_v31 = vsel %vm650_vm1, %v788_v33, 0.0 }
 0x1bc   : > { %v867_v34 = vmul.f32 %v2174_v62, %v2174_v62  ;;  %v852_v13 = vmul.f32 %v2184_v31, %v2184_v31 }
 0x1bd   : > { %v804_v43 = vsub.f32 %v1970_v44, %v772_v25  ;;  %v789_v32 = vsub.f32 %v1979_v55, %v757_v29 }
 0x1be   : > { %v706_v36 = vpop.xlane.xlu1 %705  ;;  %921 = vadd.xlane.f32.xlu1 %v866_v5  ;;  %923 = vadd.xlane.f32.xlu0 %v867_v34  ;;  %v736_v41 = vpop.xlane.xlu0 %735 }
 0x1bf   : > { %v758_v38 = vmul.f32 0.0125, %v706_v36  ;;  %v773_v37 = vmul.f32 0.0125, %v736_v41  ;;  %v2188_v6 = vsel %vm650_vm1, %v789_v32, 0.0  ;;  %v2198_v57 = vsel %vm650_vm1, %v804_v43, 0.0 }
 0x1c0   : > { %v853_v44 = vmul.f32 %v2188_v6, %v2188_v6  ;;  %v868_v21 = vmul.f32 %v2198_v57, %v2198_v57 }
 0x1c1   : > { %v790_v55 = vsub.f32 %v1991_v1, %v758_v38  ;;  %v805_v48 = vsub.f32 %v1982_v56, %v773_v37 }
 0x1c2   : > { %v738_v58 = vpop.xlane.xlu1 %737  ;;  %893 = vadd.xlane.f32.xlu1 %v852_v13  ;;  %895 = vadd.xlane.f32.xlu0 %v853_v44  ;;  %v708_v59 = vpop.xlane.xlu0 %707 }
 0x1c3   : > { %v774_v63 = vmul.f32 0.0125, %v738_v58  ;;  %v759_v53 = vmul.f32 0.0125, %v708_v59  ;;  %v2202_v14 = vsel %vm650_vm1, %v805_v48, 0.0  ;;  %v2212_v4 = vsel %vm650_vm1, %v790_v55, 0.0 }
 0x1c4   : > { %v869_v56 = vmul.f32 %v2202_v14, %v2202_v14  ;;  %v854_v33 = vmul.f32 %v2212_v4, %v2212_v4 }
 0x1c5   : > { %v806_v1 = vsub.f32 %v1994_v2, %v774_v63  ;;  %v791_v0 = vsub.f32 %v2003_v11, %v759_v53 }
 0x1c6   : > { %v710_v7 = vpop.xlane.xlu1 %709  ;;  %925 = vadd.xlane.f32.xlu1 %v868_v21  ;;  %927 = vadd.xlane.f32.xlu0 %v869_v56  ;;  %v740_v8 = vpop.xlane.xlu0 %739 }
 0x1c7   : > { %v760_v15 = vmul.f32 0.0125, %v710_v7  ;;  %v775_v61 = vmul.f32 0.0125, %v740_v8  ;;  %v2216_v22 = vsel %vm650_vm1, %v791_v0, 0.0  ;;  %v2226_v19 = vsel %vm650_vm1, %v806_v1, 0.0 }
 0x1c8   : > { %v855_v2 = vmul.f32 %v2216_v22, %v2216_v22  ;;  %v870_v43 = vmul.f32 %v2226_v19, %v2226_v19 }
 0x1c9   : > { %v792_v11 = vsub.f32 %v2015_v23, %v760_v15  ;;  %v807_v16 = vsub.f32 %v2006_v12, %v775_v61 }
 0x1ca   : > { %v742_v20 = vpop.xlane.xlu1 %741  ;;  %897 = vadd.xlane.f32.xlu1 %v854_v33  ;;  %899 = vadd.xlane.f32.xlu0 %v855_v2  ;;  %v712_v25 = vpop.xlane.xlu0 %711 }
 0x1cb   : > { %v776_v29 = vmul.f32 0.0125, %v742_v20  ;;  %v761_v5 = vmul.f32 0.0125, %v712_v25  ;;  %v2230_v34 = vsel %vm650_vm1, %v807_v16, 0.0  ;;  %v2240_v36 = vsel %vm650_vm1, %v792_v11, 0.0 }
 0x1cc   : > { %v871_v12 = vmul.f32 %v2230_v34, %v2230_v34  ;;  %v856_v55 = vmul.f32 %v2240_v36, %v2240_v36 }
 0x1cd   : > { %v808_v23 = vsub.f32 %v2018_v24, %v776_v29  ;;  %v793_v32 = vsub.f32 %v2027_v39, %v761_v5 }
 0x1ce   : > { %v714_v41 = vpop.xlane.xlu1 %713  ;;  %929 = vadd.xlane.f32.xlu1 %v870_v43  ;;  %931 = vadd.xlane.f32.xlu0 %v871_v12  ;;  %v744_v38 = vpop.xlane.xlu0 %743 }
 0x1cf   : > { %v762_v37 = vmul.f32 0.0125, %v714_v41  ;;  %v777_v13 = vmul.f32 0.0125, %v744_v38  ;;  %v2244_v44 = vsel %vm650_vm1, %v793_v32, 0.0  ;;  %v2254_v58 = vsel %vm650_vm1, %v808_v23, 0.0 }
 0x1d0   : > { %v857_v24 = vmul.f32 %v2244_v44, %v2244_v44  ;;  %v872_v21 = vmul.f32 %v2254_v58, %v2254_v58 }
 0x1d1   : > { %v794_v39 = vsub.f32 %v2039_v51, %v762_v37  ;;  %v809_v48 = vsub.f32 %v2030_v40, %v777_v13 }
 0x1d2   : > { %v746_v59 = vpop.xlane.xlu1 %745  ;;  %901 = vadd.xlane.f32.xlu1 %v856_v55  ;;  %903 = vadd.xlane.f32.xlu0 %v857_v24 }
 0x1d3   : > { %v778_v63 = vmul.f32 0.0125, %v746_v59  ;;  %v2258_v53 = vsel %vm650_vm1, %v809_v48, 0.0  ;;  %v2267_v56 = vsel %vm650_vm1, %v794_v39, 0.0  ;;  %v2280_v39 = vld [vmem:[%s2474_s3] ss:$0 sm:$0xff] }
 0x1d4   : > { %v873_v51 = vmul.f32 %v2258_v53, %v2258_v53  ;;  %v858_v1 = vmul.f32 %v2267_v56, %v2267_v56 }
 0x1d5   : > { %v810_v40 = vsub.f32 %v2042_v52, %v778_v63 }
 0x1d6   : > { %933 = vadd.xlane.f32.xlu1 %v872_v21  ;;  %935 = vadd.xlane.f32.xlu0 %v873_v51  ;;  %v2287_v21 = vld [vmem:[%s2475_s4] ss:$0 sm:$0xff] }
 0x1d7   : > { %v2273_v0 = vsel %vm650_vm1, %v810_v40, 0.0 }
 0x1d8   : > { %v874_v7 = vmul.f32 %v2273_v0, %v2273_v0 }
 0x1da   : > { %905 = vadd.xlane.f32.xlu1 %v858_v1 }
 0x1de   : > { %937 = vadd.xlane.f32.xlu1 %v874_v7 }
 0x223   : > { %v876_v8 = vpop.xlane.xlu0 %875 }
 0x224   : > { %v939_v52 = vmul.f32 0.0125, %v876_v8 }
 0x226   : > { %v971_v15 = vadd.f32 1e-05, %v939_v52 }
 0x227   : > { %v908_v61 = vpop.xlane.xlu0 %907 }
 0x228   : > { %1423 = vrsqrt.f32 %v971_v15  ;;  %v955_v33 = vmul.f32 0.0125, %v908_v61 }
 0x22a   : > { %v987_v2 = vadd.f32 1e-05, %v955_v33 }
 0x22b   : > { %v878_v11 = vpop.xlane.xlu1 %877  ;;  %v880_v16 = vpop.xlane.xlu0 %879 }
 0x22c   : > { %1425 = vrsqrt.f32 %v987_v2  ;;  %v940_v20 = vmul.f32 0.0125, %v878_v11  ;;  %v941_v25 = vmul.f32 0.0125, %v880_v16 }
 0x22e   : > { %v972_v26 = vadd.f32 1e-05, %v940_v20  ;;  %v973_v29 = vadd.f32 1e-05, %v941_v25 }
 0x22f   : > { %v910_v5 = vpop.xlane.xlu1 %909  ;;  %v912_v43 = vpop.xlane.xlu0 %911 }
 0x230   : > { %1427 = vrsqrt.f32 %v972_v26  ;;  %v956_v12 = vmul.f32 0.0125, %v910_v5  ;;  %v957_v23 = vmul.f32 0.0125, %v912_v43 }
 0x231   : > { %1429 = vrsqrt.f32 %v973_v29 }
 0x232   : > { %v988_v32 = vadd.f32 1e-05, %v956_v12  ;;  %v989_v41 = vadd.f32 1e-05, %v957_v23 }
 0x233   : > { %v882_v38 = vpop.xlane.xlu1 %881  ;;  %v884_v37 = vpop.xlane.xlu0 %883 }
 0x234   : > { %1431 = vrsqrt.f32 %v988_v32  ;;  %v942_v13 = vmul.f32 0.0125, %v882_v38  ;;  %v943_v55 = vmul.f32 0.0125, %v884_v37 }
 0x235   : > { %v1424_v24 = vpop.eup %1423  ;;  %1433 = vrsqrt.f32 %v989_v41 }
 0x236   : > { %v1035_v48 = vmul.f32 %v1424_v24, %v2056_v9  ;;  %v974_v59 = vadd.f32 1e-05, %v942_v13  ;;  %v975_v63 = vadd.f32 1e-05, %v943_v55 }
 0x237   : > { %v914_v51 = vpop.xlane.xlu1 %913  ;;  %v916_v40 = vpop.xlane.xlu0 %915 }
 0x238   : > { %v1073_v1 = vmul.f32 %v2280_v39, %v1035_v48  ;;  %1435 = vrsqrt.f32 %v974_v59  ;;  %v958_v7 = vmul.f32 0.0125, %v914_v51  ;;  %v959_v8 = vmul.f32 0.0125, %v916_v40 }
 0x239   : > { %v1426_v52 = vpop.eup %1425  ;;  %1437 = vrsqrt.f32 %v975_v63 }
 0x23a   : > { %v1111_v9 = vadd.f32 %v2287_v21, %v1073_v1  ;;  %v1051_v15 = vmul.f32 %v1426_v52, %v2063_v30  ;;  %v990_v61 = vadd.f32 1e-05, %v958_v7  ;;  %v991_v33 = vadd.f32 1e-05, %v959_v8 }
 0x23b   : > { %v886_v2 = vpop.xlane.xlu1 %885  ;;  %v888_v11 = vpop.xlane.xlu0 %887 }
 0x23c   : > { %v1143_v16 = vmax.f32 %v1111_v9, 0.0  ;;  %v1089_v20 = vmul.f32 %v2280_v39, %v1051_v15  ;;  %1439 = vrsqrt.f32 %v990_v61  ;;  %v944_v25 = vmul.f32 0.0125, %v886_v2 }
 0x23d   : > { %v1428_v26 = vpop.eup %1427  ;;  %1441 = vrsqrt.f32 %v991_v33  ;;  %v945_v29 = vmul.f32 0.0125, %v888_v11 }
 0x23e   : > { %v1430_v5 = vpop.eup %1429  ;;  %1175 = vst [vmem:[%s2295_s23] sm:$0xff] %v1143_v16  ;;  %v1127_v43 = vadd.f32 %v2287_v21, %v1089_v20  ;;  %v1036_v30 = vmul.f32 %v1428_v26, %v2076_v47  ;;  %v976_v12 = vadd.f32 1e-05, %v944_v25 }
 0x23f   : > { %v1037_v23 = vmul.f32 %v1430_v5, %v2072_v42  ;;  %v977_v32 = vadd.f32 1e-05, %v945_v29  ;;  %v918_v41 = vpop.xlane.xlu1 %917  ;;  %v920_v38 = vpop.xlane.xlu0 %919 }
 0x240   : > { %v1159_v37 = vmax.f32 %v1127_v43, 0.0  ;;  %v1074_v13 = vmul.f32 %v2280_v39, %v1036_v30  ;;  %1443 = vrsqrt.f32 %v976_v12  ;;  %v960_v55 = vmul.f32 0.0125, %v918_v41 }
 0x241   : > { %v1432_v24 = vpop.eup %1431  ;;  %v1075_v48 = vmul.f32 %v2280_v39, %v1037_v23  ;;  %1445 = vrsqrt.f32 %v977_v32  ;;  %v961_v59 = vmul.f32 0.0125, %v920_v38 }
 0x242   : > { %v1434_v63 = vpop.eup %1433  ;;  %1191 = vst [vmem:[%s2295_s23 + $0x80] sm:$0xff] %v1159_v37  ;;  %v1112_v47 = vadd.f32 %v2287_v21, %v1074_v13  ;;  %v1052_v51 = vmul.f32 %v1432_v24, %v2086_v49  ;;  %v992_v42 = vadd.f32 1e-05, %v960_v55 }
 0x243   : > { %v1113_v40 = vadd.f32 %v2287_v21, %v1075_v48  ;;  %v1053_v1 = vmul.f32 %v1434_v63, %v2090_v60  ;;  %v993_v7 = vadd.f32 1e-05, %v961_v59  ;;  %v890_v8 = vpop.xlane.xlu1 %889  ;;  %v892_v52 = vpop.xlane.xlu0 %891 }
 0x244   : > { %v1144_v9 = vmax.f32 %v1112_v47, 0.0  ;;  %v1090_v15 = vmul.f32 %v2280_v39, %v1052_v51  ;;  %1447 = vrsqrt.f32 %v992_v42  ;;  %v946_v61 = vmul.f32 0.0125, %v890_v8 }
 0x245   : > { %v1436_v33 = vpop.eup %1435  ;;  %v1145_v2 = vmax.f32 %v1113_v40, 0.0  ;;  %v1091_v11 = vmul.f32 %v2280_v39, %v1053_v1  ;;  %1449 = vrsqrt.f32 %v993_v7  ;;  %v947_v49 = vmul.f32 0.0125, %v892_v52 }
 0x246   : > { %v1438_v16 = vpop.eup %1437  ;;  %1176 = vst [vmem:[%s2295_s23 + $0x8] sm:$0xff] %v1144_v9  ;;  %v1128_v20 = vadd.f32 %v2287_v21, %v1090_v15  ;;  %v1038_v60 = vmul.f32 %v1436_v33, %v2100_v27  ;;  %v978_v25 = vadd.f32 1e-05, %v946_v61 }
 0x247   : > { %1177 = vst [vmem:[%s2295_s23 + $0x10] sm:$0xff] %v1145_v2  ;;  %v1129_v26 = vadd.f32 %v2287_v21, %v1091_v11  ;;  %v1039_v29 = vmul.f32 %v1438_v16, %v2104_v10  ;;  %v979_v5 = vadd.f32 1e-05, %v947_v49  ;;  %v922_v43 = vpop.xlane.xlu1 %921  ;;  %v924_v30 = vpop.xlane.xlu0 %923 }
 0x248   : > { %v1160_v12 = vmax.f32 %v1128_v20, 0.0  ;;  %v1076_v23 = vmul.f32 %v2280_v39, %v1038_v60  ;;  %1451 = vrsqrt.f32 %v978_v25  ;;  %v962_v32 = vmul.f32 0.0125, %v922_v43 }
 0x249   : > { %v1440_v41 = vpop.eup %1439  ;;  %v1161_v38 = vmax.f32 %v1129_v26, 0.0  ;;  %v1077_v27 = vmul.f32 %v2280_v39, %v1039_v29  ;;  %1453 = vrsqrt.f32 %v979_v5  ;;  %v963_v37 = vmul.f32 0.0125, %v924_v30 }
 0x24a   : > { %v1442_v13 = vpop.eup %1441  ;;  %1192 = vst [vmem:[%s2295_s23 + $0x88] sm:$0xff] %v1160_v12  ;;  %v1114_v55 = vadd.f32 %v2287_v21, %v1076_v23  ;;  %v1054_v10 = vmul.f32 %v1440_v41, %v2114_v17  ;;  %v994_v24 = vadd.f32 1e-05, %v962_v32 }
 0x24b   : > { %1193 = vst [vmem:[%s2295_s23 + $0x90] sm:$0xff] %v1161_v38  ;;  %v1115_v48 = vadd.f32 %v2287_v21, %v1077_v27  ;;  %v1055_v59 = vmul.f32 %v1442_v13, %v2118_v28  ;;  %v995_v63 = vadd.f32 1e-05, %v963_v37  ;;  %v894_v47 = vpop.xlane.xlu1 %893  ;;  %v896_v51 = vpop.xlane.xlu0 %895 }
 0x24c   : > { %v1146_v42 = vmax.f32 %v1114_v55, 0.0  ;;  %v1092_v40 = vmul.f32 %v2280_v39, %v1054_v10  ;;  %1455 = vrsqrt.f32 %v994_v24  ;;  %v948_v1 = vmul.f32 0.0125, %v894_v47 }
 0x24d   : > { %v1444_v7 = vpop.eup %1443  ;;  %v1147_v8 = vmax.f32 %v1115_v48, 0.0  ;;  %v1093_v17 = vmul.f32 %v2280_v39, %v1055_v59  ;;  %1457 = vrsqrt.f32 %v995_v63  ;;  %v949_v52 = vmul.f32 0.0125, %v896_v51 }
 0x24e   : > { %v1446_v9 = vpop.eup %1445  ;;  %1178 = vst [vmem:[%s2295_s23 + $0x18] sm:$0xff] %v1146_v42  ;;  %v1130_v15 = vadd.f32 %v2287_v21, %v1092_v40  ;;  %v1040_v28 = vmul.f32 %v1444_v7, %v2128_v35  ;;  %v980_v61 = vadd.f32 1e-05, %v948_v1 }
 0x24f   : > { %1179 = vst [vmem:[%s2295_s23 + $0x20] sm:$0xff] %v1147_v8  ;;  %v1131_v33 = vadd.f32 %v2287_v21, %v1093_v17  ;;  %v1041_v2 = vmul.f32 %v1446_v9, %v2132_v45  ;;  %v981_v11 = vadd.f32 1e-05, %v949_v52  ;;  %v926_v49 = vpop.xlane.xlu1 %925  ;;  %v928_v16 = vpop.xlane.xlu0 %927 }
 0x250   : > { %v1162_v20 = vmax.f32 %v1130_v15, 0.0  ;;  %v1078_v60 = vmul.f32 %v2280_v39, %v1040_v28  ;;  %1459 = vrsqrt.f32 %v980_v61  ;;  %v964_v25 = vmul.f32 0.0125, %v926_v49 }
 0x251   : > { %v1448_v26 = vpop.eup %1447  ;;  %v1163_v29 = vmax.f32 %v1131_v33, 0.0  ;;  %v1079_v35 = vmul.f32 %v2280_v39, %v1041_v2  ;;  %1461 = vrsqrt.f32 %v981_v11  ;;  %v965_v5 = vmul.f32 0.0125, %v928_v16 }
 0x252   : > { %v1450_v43 = vpop.eup %1449  ;;  %1194 = vst [vmem:[%s2295_s23 + $0x98] sm:$0xff] %v1162_v20  ;;  %v1116_v30 = vadd.f32 %v2287_v21, %v1078_v60  ;;  %v1056_v45 = vmul.f32 %v1448_v26, %v2142_v50  ;;  %v996_v12 = vadd.f32 1e-05, %v964_v25 }
 0x253   : > { %1195 = vst [vmem:[%s2295_s23 + $0xa0] sm:$0xff] %v1163_v29  ;;  %v1117_v23 = vadd.f32 %v2287_v21, %v1079_v35  ;;  %v1057_v32 = vmul.f32 %v1450_v43, %v2146_v46  ;;  %v997_v41 = vadd.f32 1e-05, %v965_v5  ;;  %v898_v38 = vpop.xlane.xlu1 %897  ;;  %v900_v27 = vpop.xlane.xlu0 %899 }
 0x254   : > { %v1148_v37 = vmax.f32 %v1116_v30, 0.0  ;;  %v1094_v13 = vmul.f32 %v2280_v39, %v1056_v45  ;;  %1463 = vrsqrt.f32 %v996_v12  ;;  %v950_v55 = vmul.f32 0.0125, %v898_v38 }
 0x255   : > { %v1452_v10 = vpop.eup %1451  ;;  %v1149_v24 = vmax.f32 %v1117_v23, 0.0  ;;  %v1095_v50 = vmul.f32 %v2280_v39, %v1057_v32  ;;  %1465 = vrsqrt.f32 %v997_v41  ;;  %v951_v48 = vmul.f32 0.0125, %v900_v27 }
 0x256   : > { %v1454_v59 = vpop.eup %1453  ;;  %1180 = vst [vmem:[%s2295_s23 + $0x28] sm:$0xff] %v1148_v37  ;;  %v1132_v63 = vadd.f32 %v2287_v21, %v1094_v13  ;;  %v1042_v46 = vmul.f32 %v1452_v10, %v2156_v3  ;;  %v982_v47 = vadd.f32 1e-05, %v950_v55 }
 0x257   : > { %1181 = vst [vmem:[%s2295_s23 + $0x30] sm:$0xff] %v1149_v24  ;;  %v1133_v51 = vadd.f32 %v2287_v21, %v1095_v50  ;;  %v1043_v42 = vmul.f32 %v1454_v59, %v2160_v54  ;;  %v983_v40 = vadd.f32 1e-05, %v951_v48  ;;  %v930_v1 = vpop.xlane.xlu1 %929  ;;  %v932_v7 = vpop.xlane.xlu0 %931 }
 0x258   : > { %v1164_v8 = vmax.f32 %v1132_v63, 0.0  ;;  %v1080_v17 = vmul.f32 %v2280_v39, %v1042_v46  ;;  %1467 = vrsqrt.f32 %v982_v47  ;;  %v966_v52 = vmul.f32 0.0125, %v930_v1 }
 0x259   : > { %v1456_v9 = vpop.eup %1455  ;;  %v1165_v15 = vmax.f32 %v1133_v51, 0.0  ;;  %v1081_v3 = vmul.f32 %v2280_v39, %v1043_v42  ;;  %1469 = vrsqrt.f32 %v983_v40  ;;  %v967_v28 = vmul.f32 0.0125, %v932_v7 }
 0x25a   : > { %v1458_v61 = vpop.eup %1457  ;;  %1196 = vst [vmem:[%s2295_s23 + $0xa8] sm:$0xff] %v1164_v8  ;;  %v1118_v33 = vadd.f32 %v2287_v21, %v1080_v17  ;;  %v1058_v54 = vmul.f32 %v1456_v9, %v2170_v18  ;;  %v998_v2 = vadd.f32 1e-05, %v966_v52 }
 0x25b   : > { %1197 = vst [vmem:[%s2295_s23 + $0xb0] sm:$0xff] %v1165_v15  ;;  %v1119_v11 = vadd.f32 %v2287_v21, %v1081_v3  ;;  %v1059_v49 = vmul.f32 %v1458_v61, %v2174_v62  ;;  %v999_v16 = vadd.f32 1e-05, %v967_v28  ;;  %v902_v20 = vpop.xlane.xlu1 %901  ;;  %v904_v60 = vpop.xlane.xlu0 %903 }
 0x25c   : > { %v1150_v25 = vmax.f32 %v1118_v33, 0.0  ;;  %v1096_v26 = vmul.f32 %v2280_v39, %v1058_v54  ;;  %1471 = vrsqrt.f32 %v998_v2  ;;  %v952_v29 = vmul.f32 0.0125, %v902_v20 }
 0x25d   : > { %v1460_v35 = vpop.eup %1459  ;;  %v1151_v5 = vmax.f32 %v1119_v11, 0.0  ;;  %v1097_v18 = vmul.f32 %v2280_v39, %v1059_v49  ;;  %1473 = vrsqrt.f32 %v999_v16  ;;  %v953_v43 = vmul.f32 0.0125, %v904_v60 }
 0x25e   : > { %v1462_v30 = vpop.eup %1461  ;;  %1182 = vst [vmem:[%s2295_s23 + $0x38] sm:$0xff] %v1150_v25  ;;  %v1134_v45 = vadd.f32 %v2287_v21, %v1096_v26  ;;  %v1044_v62 = vmul.f32 %v1460_v35, %v2184_v31  ;;  %v984_v12 = vadd.f32 1e-05, %v952_v29 }
 0x25f   : > { %1183 = vst [vmem:[%s2295_s23 + $0x40] sm:$0xff] %v1151_v5  ;;  %v1135_v23 = vadd.f32 %v2287_v21, %v1097_v18  ;;  %v1045_v32 = vmul.f32 %v1462_v30, %v2188_v6  ;;  %v985_v41 = vadd.f32 1e-05, %v953_v43  ;;  %v934_v38 = vpop.xlane.xlu1 %933  ;;  %v936_v27 = vpop.xlane.xlu0 %935 }
 0x260   : > { %v1166_v37 = vmax.f32 %v1134_v45, 0.0  ;;  %v1082_v13 = vmul.f32 %v2280_v39, %v1044_v62  ;;  %1475 = vrsqrt.f32 %v984_v12  ;;  %v968_v55 = vmul.f32 0.0125, %v934_v38 }
 0x261   : > { %v1464_v10 = vpop.eup %1463  ;;  %v1167_v24 = vmax.f32 %v1135_v23, 0.0  ;;  %v1083_v31 = vmul.f32 %v2280_v39, %v1045_v32  ;;  %1477 = vrsqrt.f32 %v985_v41  ;;  %v969_v50 = vmul.f32 0.0125, %v936_v27 }
 0x262   : > { %v1466_v48 = vpop.eup %1465  ;;  %1198 = vst [vmem:[%s2295_s23 + $0xb8] sm:$0xff] %v1166_v37  ;;  %v1120_v59 = vadd.f32 %v2287_v21, %v1082_v13  ;;  %v1060_v6 = vmul.f32 %v1464_v10, %v2198_v57  ;;  %v1000_v63 = vadd.f32 1e-05, %v968_v55 }
 0x263   : > { %1199 = vst [vmem:[%s2295_s23 + $0xc0] sm:$0xff] %v1167_v24  ;;  %v1121_v46 = vadd.f32 %v2287_v21, %v1083_v31  ;;  %v1061_v47 = vmul.f32 %v1466_v48, %v2202_v14  ;;  %v1001_v51 = vadd.f32 1e-05, %v969_v50  ;;  %v906_v42 = vpop.xlane.xlu1 %905 }
 0x264   : > { %v1152_v40 = vmax.f32 %v1120_v59, 0.0  ;;  %v1098_v1 = vmul.f32 %v2280_v39, %v1060_v6  ;;  %1479 = vrsqrt.f32 %v1000_v63  ;;  %v954_v7 = vmul.f32 0.0125, %v906_v42 }
 0x265   : > { %v1468_v8 = vpop.eup %1467  ;;  %v1153_v17 = vmax.f32 %v1121_v46, 0.0  ;;  %v1099_v52 = vmul.f32 %v2280_v39, %v1061_v47  ;;  %1481 = vrsqrt.f32 %v1001_v51 }
 0x266   : > { %v1470_v57 = vpop.eup %1469  ;;  %1184 = vst [vmem:[%s2295_s23 + $0x48] sm:$0xff] %v1152_v40  ;;  %v1136_v9 = vadd.f32 %v2287_v21, %v1098_v1  ;;  %v1046_v14 = vmul.f32 %v1468_v8, %v2212_v4  ;;  %v986_v15 = vadd.f32 1e-05, %v954_v7 }
 0x267   : > { %1185 = vst [vmem:[%s2295_s23 + $0x50] sm:$0xff] %v1153_v17  ;;  %v1137_v3 = vadd.f32 %v2287_v21, %v1099_v52  ;;  %v1047_v28 = vmul.f32 %v1470_v57, %v2216_v22  ;;  %v938_v61 = vpop.xlane.xlu1 %937 }
 0x268   : > { %v1168_v33 = vmax.f32 %v1136_v9, 0.0  ;;  %v1084_v54 = vmul.f32 %v2280_v39, %v1046_v14  ;;  %1483 = vrsqrt.f32 %v986_v15  ;;  %v970_v2 = vmul.f32 0.0125, %v938_v61 }
 0x269   : > { %v1472_v11 = vpop.eup %1471  ;;  %v1169_v49 = vmax.f32 %v1137_v3, 0.0  ;;  %v1085_v16 = vmul.f32 %v2280_v39, %v1047_v28 }
 0x26a   : > { %v1474_v20 = vpop.eup %1473  ;;  %1200 = vst [vmem:[%s2295_s23 + $0xc8] sm:$0xff] %v1168_v33  ;;  %v1122_v4 = vadd.f32 %v2287_v21, %v1084_v54  ;;  %v1062_v60 = vmul.f32 %v1472_v11, %v2226_v19  ;;  %v1002_v25 = vadd.f32 1e-05, %v970_v2 }
 0x26b   : > { %1201 = vst [vmem:[%s2295_s23 + $0xd0] sm:$0xff] %v1169_v49  ;;  %v1123_v22 = vadd.f32 %v2287_v21, %v1085_v16  ;;  %v1063_v26 = vmul.f32 %v1474_v20, %v2230_v34 }
 0x26c   : > { %v1154_v29 = vmax.f32 %v1122_v4, 0.0  ;;  %v1100_v35 = vmul.f32 %v2280_v39, %v1062_v60  ;;  %1485 = vrsqrt.f32 %v1002_v25 }
 0x26d   : > { %v1476_v5 = vpop.eup %1475  ;;  %v1155_v18 = vmax.f32 %v1123_v22, 0.0  ;;  %v1101_v43 = vmul.f32 %v2280_v39, %v1063_v26 }
 0x26e   : > { %v1478_v30 = vpop.eup %1477  ;;  %1186 = vst [vmem:[%s2295_s23 + $0x58] sm:$0xff] %v1154_v29  ;;  %v1138_v19 = vadd.f32 %v2287_v21, %v1100_v35  ;;  %v1048_v45 = vmul.f32 %v1476_v5, %v2240_v36 }
 0x26f   : > { %1187 = vst [vmem:[%s2295_s23 + $0x60] sm:$0xff] %v1155_v18  ;;  %v1139_v62 = vadd.f32 %v2287_v21, %v1101_v43  ;;  %v1049_v34 = vmul.f32 %v1478_v30, %v2244_v44 }
 0x270   : > { %v1170_v12 = vmax.f32 %v1138_v19, 0.0  ;;  %v1086_v23 = vmul.f32 %v2280_v39, %v1048_v45 }
 0x271   : > { %v1480_v32 = vpop.eup %1479  ;;  %v1171_v41 = vmax.f32 %v1139_v62, 0.0  ;;  %v1087_v38 = vmul.f32 %v2280_v39, %v1049_v34 }
 0x272   : > { %v1482_v27 = vpop.eup %1481  ;;  %1202 = vst [vmem:[%s2295_s23 + $0xd8] sm:$0xff] %v1170_v12  ;;  %v1124_v37 = vadd.f32 %v2287_v21, %v1086_v23  ;;  %v1064_v36 = vmul.f32 %v1480_v32, %v2254_v58 }
 0x273   : > { %1203 = vst [vmem:[%s2295_s23 + $0xe0] sm:$0xff] %v1171_v41  ;;  %v1125_v13 = vadd.f32 %v2287_v21, %v1087_v38  ;;  %v1065_v44 = vmul.f32 %v1482_v27, %v2258_v53 }
 0x274   : > { %v1156_v55 = vmax.f32 %v1124_v37, 0.0  ;;  %v1102_v10 = vmul.f32 %v2280_v39, %v1064_v36 }
 0x275   : > { %v1484_v24 = vpop.eup %1483  ;;  %v1157_v31 = vmax.f32 %v1125_v13, 0.0  ;;  %v1103_v50 = vmul.f32 %v2280_v39, %v1065_v44 }
 0x276   : > { %1188 = vst [vmem:[%s2295_s23 + $0x68] sm:$0xff] %v1156_v55  ;;  %v1140_v48 = vadd.f32 %v2287_v21, %v1102_v10  ;;  %v1050_v58 = vmul.f32 %v1484_v24, %v2267_v56 }
 0x277   : > { %1189 = vst [vmem:[%s2295_s23 + $0x70] sm:$0xff] %v1157_v31  ;;  %v1141_v59 = vadd.f32 %v2287_v21, %v1103_v50 }
 0x278   : > { %v1172_v53 = vmax.f32 %v1140_v48, 0.0  ;;  %v1088_v6 = vmul.f32 %v2280_v39, %v1050_v58 }
 0x279   : > { %v1486_v63 = vpop.eup %1485  ;;  %v1173_v46 = vmax.f32 %v1141_v59, 0.0 }
 0x27a   : > { %1204 = vst [vmem:[%s2295_s23 + $0xe8] sm:$0xff] %v1172_v53  ;;  %v1126_v47 = vadd.f32 %v2287_v21, %v1088_v6  ;;  %v1066_v51 = vmul.f32 %v1486_v63, %v2273_v0 }
 0x27b   : > { %1205 = vst [vmem:[%s2295_s23 + $0xf0] sm:$0xff] %v1173_v46 }
 0x27c   : > { %v1158_v42 = vmax.f32 %v1126_v47, 0.0  ;;  %v1104_v56 = vmul.f32 %v2280_v39, %v1066_v51 }
 0x27e   : > { %1190 = vst [vmem:[%s2295_s23 + $0x78] sm:$0xff] %v1158_v42  ;;  %v1142_v40 = vadd.f32 %v2287_v21, %v1104_v56 }
 0x280   : > { %v1174_v0 = vmax.f32 %v1142_v40, 0.0 }
 0x282   : > { %1206 = vst [vmem:[%s2295_s23 + $0xf8] sm:$0xff] %v1174_v0 }
 0x283   : > { %1500 = shalt.err (!%p1497_p3)
}
 0x284   : > { %s1501_s12 = scalar_lea.hbm %s2424_s7, 4096  ;;  %s1505_s15 = scalar_lea.hbm %s2476_s5, 8192 }
 0x285   : > { %p1502_p4 = scmp.ne.s32.totalorder %s2424_s7, %s1501_s12  ;;  %p1506_p9 = scmp.lt.s32.totalorder %s2424_s7, %s2476_s5 }
 0x286   : > { %p1507_p10 = scmp.lt.s32.totalorder %s1505_s15, %s1501_s12 }
 0x287   : > { %p1503_p7 = pnand %p1502_p4, %p1621_p5 }
 0x288   : > { %p1508_p11 = por %p1507_p10, %p1506_p9 }
 0x289   : > { %p1504_p8 = pneg %p1503_p7 }
 0x28b   : > { %p1509_p12 = pnand %p1508_p11, %p1504_p8 }
 0x28d   : > { %1512 = shalt.err (!%p1509_p12)
}
 0x28e   : > { %s1551_s23 = smov 128   ;;  %s1552_s25 = smov 8  }
 0x28f   : > { %1381 = dma.vmem_to_hbm [thread:$0]  (%p1621_p5), %s2426_s26, 4096, %s2424_s7, %s2431_s8, %s1551_s23, %s1551_s23, %s1552_s25  }
 0x290 PF: > { %p1387_p13 = scmp.ge.s32.totalorder %s1547_s21, 2  ;;  %s1236_s6 = sand.u32 1, %s1535_s18  }
 0x291   : > { %s1237_s30 = scalar_lea.sflag [#allocation3], %s1236_s6 }
 0x292   : > { %p1384_p0 = pnand %p1387_p13, %p1625_p6 }
 0x294   : > { %p1385_p1 = pneg %p1384_p0 }
 0x296   : > { %1530 = dma.done.wait (%p1385_p1), %s1237_s30, 4096  }
 0x297   : > { %1532 = vsyncadd (%p1385_p1), %s1237_s30, 4294963200  ;;  %p15_p2 = scmp.ge.s32.totalorder %s1608_s24, 4   ;;  %s2479_s18 = smov %s1539_s19 }
 0x298   : > { %s2480_s19 = smov %s1543_s20  ;;  %s2481_s20 = smov %s1619_s27 }
 0x299   : > { %s2482_s21 = smov %s1608_s24  ;;  %17 = sbr.rel (!%p15_p2) target bundleno = 3 (0x3), region = 75 }
 0x29e   :  { %1242 = vsyncpa [#allocation3], 1 }
 0x29f   :  { %1244 = vsyncpa [#allocation3 + $0x1], 1 }

</bundles_post_ra>
